<compile_context>
chip_gen: v5e
topology: v5e:2x2
jax: 0.10.0
libtpu: 0.0.40
codegen_flags: <defaults>
</compile_context>

<pallas_src>
import jax
import jax.numpy as jnp
from jax.experimental import pallas as pl
from jax.experimental.pallas import tpu as pltpu

_LANE = 128
_TILE_H = 8          # spatial row tile (rows of output per grid step)


def _round_up(x, m):
    return ((x + m - 1) // m) * m


def _fold_bn(gamma, beta, mean, var, eps=1e-5):
    scale = gamma / jnp.sqrt(var + eps)
    bias = beta - mean * scale
    return scale.astype(jnp.float32), bias.astype(jnp.float32)


def _pad2(m, rows, cols):
    out = jnp.zeros((rows, cols), jnp.float32)
    return out.at[: m.shape[0], : m.shape[1]].set(m)


def _pad_bias(b, cols):
    out = jnp.zeros((1, cols), jnp.float32)
    return out.at[0, : b.shape[0]].set(b)


def _vmem_limit_bytes():
    # Generation-aware VMEM cap: v5e/v6e have 128 MiB VMEM per core, v7x only 64 MiB.
    try:
        kind = jax.devices()[0].device_kind.lower()
    except Exception:  # pragma: no cover - defensive
        kind = ""
    if ("v5" in kind) or ("v6" in kind):
        return 100 * 1024 * 1024
    return 52 * 1024 * 1024


def bottleneck_kernel(x_ref,                 # (TH+2, W, Cin_p) bf16  (haloed rows)
                      w1_ref, b1_ref,        # (Cin_p, P_p), (1, P_p)
                      w2_ref, b2_ref,        # (3, 3*P_p, P_p), (1, P_p)
                      w34_ref, b34_ref,      # (P_p+Cin_p, Cout_p), (1, Cout_p)
                      o_ref,                 # (TH, W, Cout_p) bf16
                      col_ref):              # (TH+2, W, 3*P_p) bf16 scratch
    t = pl.program_id(1)
    n_tiles = pl.num_programs(1)
    THp2, W, Cin_p = x_ref.shape
    TH = THp2 - 2
    P = w1_ref.shape[1]
    Cout = w34_ref.shape[1]
    f32 = jnp.float32

    x_all = x_ref[...]                                        # (TH+2, W, Cin_p)

    # conv1 (1x1, BN1 scale pre-folded) + bias + ReLU over the haloed row window.
    t1 = jnp.dot(x_all.reshape(THp2 * W, Cin_p), w1_ref[...],
                 preferred_element_type=f32)
    t1 = jnp.maximum(t1 + b1_ref[...], 0.0)

    # Lane-concatenated (left | center | right) slab for the 3x3 conv.
    t1b = t1.reshape(THp2, W, P).astype(col_ref.dtype)
    zcol = jnp.zeros((THp2, 1, P), col_ref.dtype)
    left = jnp.concatenate([zcol, t1b[:, : W - 1, :]], axis=1)   # value from x-1
    right = jnp.concatenate([t1b[:, 1:, :], zcol], axis=1)       # value from x+1
    col_ref[:, :, pl.ds(0, P)] = left
    col_ref[:, :, pl.ds(P, P)] = t1b
    col_ref[:, :, pl.ds(2 * P, P)] = right

    # SAME padding of the conv2 *input*: zero the vertical halo rows at the image
    # boundary (they must be 0, not conv1 applied to zero-padded x).
    zrow = jnp.zeros((1, W, 3 * P), col_ref.dtype)

    @pl.when(t == 0)
    def _():
        col_ref[pl.ds(0, 1)] = zrow

    @pl.when(t == n_tiles - 1)
    def _():
        col_ref[pl.ds(TH + 1, 1)] = zrow

    # conv2 (3x3, stride 1, pad 1; BN2 scale pre-folded): 3 deep-K (K=3*P) matmuls
    # over row-shifted, lane-aligned slab slices; first tap seeds the accumulator.
    acc = jnp.dot(col_ref[pl.ds(0, TH)].reshape(TH * W, 3 * P), w2_ref[0],
                  preferred_element_type=f32)
    acc = acc + jnp.dot(col_ref[pl.ds(1, TH)].reshape(TH * W, 3 * P), w2_ref[1],
                        preferred_element_type=f32)
    acc = acc + jnp.dot(col_ref[pl.ds(2, TH)].reshape(TH * W, 3 * P), w2_ref[2],
                        preferred_element_type=f32)
    t2 = jnp.maximum(acc + b2_ref[...], 0.0).astype(jnp.bfloat16)

    # Fused conv3 + downsample branch: one deep-K matmul, LHS = [t2 | x_center],
    # RHS = vstack([w3, wd]), bias = b3 + bd.  Then residual ReLU.
    x_center = x_all[1:TH + 1].reshape(TH * W, Cin_p)
    lhs = jnp.concatenate([t2, x_center], axis=-1)            # (TH*W, P+Cin_p) bf16
    out = jnp.dot(lhs, w34_ref[...], preferred_element_type=f32) + b34_ref[...]
    out = jnp.maximum(out, 0.0)
    o_ref[...] = out.reshape(TH, W, Cout).astype(o_ref.dtype)


@jax.jit
def resnet_bottleneck_block(x_nchw,
                            conv1_w, bn1,
                            conv2_w, bn2,
                            conv3_w, bn3,
                            convd_w, bnd):
    """x_nchw: (N, Cin, H, W). conv*_w in PyTorch layout (Cout, Cin, KH, KW);
    bn* = (gamma, beta, running_mean, running_var)."""
    N, Cin, H, W = x_nchw.shape
    P = conv1_w.shape[0]
    Cout = conv3_w.shape[0]
    Cin_p = _round_up(Cin, _LANE)
    P_p = _round_up(P, _LANE)
    Cout_p = _round_up(Cout, _LANE)

    TH = _TILE_H if (H % _TILE_H == 0) else H
    T = H // TH

    s1, b1 = _fold_bn(*bn1)
    s2, b2 = _fold_bn(*bn2)
    s3, b3 = _fold_bn(*bn3)
    sd, bd = _fold_bn(*bnd)

    # BN scale folded into conv weights, matmul layout (Cin-major), zero-padded to
    # lane-multiple channel counts, bf16 operands for the MXU.
    w1p = _pad2(conv1_w[:, :, 0, 0].T * s1[None, :], Cin_p, P_p).astype(jnp.bfloat16)
    w3p = _pad2(conv3_w[:, :, 0, 0].T * s3[None, :], P_p, Cout_p)
    wdp = _pad2(convd_w[:, :, 0, 0].T * sd[None, :], Cin_p, Cout_p)
    # Fused conv3+downsample weights: deep-K RHS = vstack([w3, wd]).
    w34p = jnp.concatenate([w3p, wdp], axis=0).astype(jnp.bfloat16)
    # w2p[dy] = vstack over dx of (ci, co) tap weights, matching the lane order
    # (left | center | right) of the slab built in the kernel.  Shape (3, 3*P_p, P_p).
    w2p = jnp.stack([
        jnp.concatenate([_pad2(conv2_w[:, :, dy, dx].T * s2[None, :], P_p, P_p)
                         for dx in range(3)], axis=0)
        for dy in range(3)], axis=0).astype(jnp.bfloat16)

    b1p = _pad_bias(b1, P_p)
    b2p = _pad_bias(b2, P_p)
    b34p = _pad_bias(b3, Cout_p) + _pad_bias(bd, Cout_p)

    # NCHW -> NHWC, pad channels to a lane multiple, bf16 for MXU / HBM traffic.
    x = jnp.transpose(x_nchw, (0, 2, 3, 1))
    x = jnp.pad(x, ((0, 0), (0, 0), (0, 0), (0, Cin_p - Cin))).astype(jnp.bfloat16)
    # Zero-pad H by 1 row top/bottom and build overlapping row tiles with a 2-row
    # halo so the spatial axis can be tiled with plain Blocked BlockSpecs.
    x = jnp.pad(x, ((0, 0), (1, 1), (0, 0), (0, 0)))
    row_idx = jnp.arange(T)[:, None] * TH + jnp.arange(TH + 2)[None, :]
    x_tiles = x[:, row_idx]                    # (N, T, TH+2, W, Cin_p)

    def const_spec(a):
        nd = a.ndim
        return pl.BlockSpec(a.shape, lambda n, t, _nd=nd: (0,) * _nd,
                            pipeline_mode=pl.Buffered(1))

    flops = 2 * N * H * W * (Cin_p * P_p + 9 * P_p * P_p + (P_p + Cin_p) * Cout_p)
    bytes_accessed = (x_tiles.size * 2 + N * H * W * Cout_p * 2
                      + (w1p.size + w2p.size + w34p.size) * 2)

    out_p = pl.pallas_call(
        bottleneck_kernel,
        out_shape=jax.ShapeDtypeStruct((N, H, W, Cout_p), jnp.bfloat16),
        grid_spec=pltpu.PrefetchScalarGridSpec(
            num_scalar_prefetch=0,
            grid=(N, T),
            in_specs=[
                pl.BlockSpec((None, None, TH + 2, W, Cin_p),
                             lambda n, t: (n, t, 0, 0, 0)),
                const_spec(w1p), const_spec(b1p),
                const_spec(w2p), const_spec(b2p),
                const_spec(w34p), const_spec(b34p),
            ],
            out_specs=pl.BlockSpec((None, TH, W, Cout_p),
                                   lambda n, t: (n, t, 0, 0)),
            scratch_shapes=[pltpu.VMEM((TH + 2, W, 3 * P_p), jnp.bfloat16)],
        ),
        compiler_params=pltpu.CompilerParams(
            dimension_semantics=("parallel", "parallel"),
            vmem_limit_bytes=_vmem_limit_bytes(),
        ),
        cost_estimate=pl.CostEstimate(flops=flops, transcendentals=0,
                                      bytes_accessed=bytes_accessed),
    )(x_tiles, w1p, b1p, w2p, b2p, w34p, b34p)

    out = out_p[:, :, :, :Cout].astype(jnp.float32)   # drop padded lanes, back to f32
    return jnp.transpose(out, (0, 3, 1, 2))           # NHWC -> NCHW


if __name__ == "__main__":
    key = jax.random.PRNGKey(0)
    in_channels, out_channels = 4, 16
    planes = out_channels // 4                  # Bottleneck.expansion == 4
    N, H, W = 2, 16, 16

    keys = jax.random.split(key, 10)

    def nrm(k, shape, scale=0.1):
        return scale * jax.random.normal(k, shape, jnp.float32)

    x = jax.random.normal(keys[0], (N, in_channels, H, W), jnp.float32)

    # Conv weights in PyTorch layout (Cout, Cin, KH, KW)
    conv1_w = nrm(keys[1], (planes, in_channels, 1, 1))
    conv2_w = nrm(keys[2], (planes, planes, 3, 3))
    conv3_w = nrm(keys[3], (out_channels, planes, 1, 1))
    convd_w = nrm(keys[4], (out_channels, in_channels, 1, 1))

    def bn_params(k, c):
        k1, k2, k3, k4 = jax.random.split(k, 4)
        gamma = 1.0 + 0.1 * jax.random.normal(k1, (c,), jnp.float32)
        beta = 0.1 * jax.random.normal(k2, (c,), jnp.float32)
        mean = 0.1 * jax.random.normal(k3, (c,), jnp.float32)
        var = jnp.abs(1.0 + 0.1 * jax.random.normal(k4, (c,), jnp.float32))
        return gamma, beta, mean, var

    bn1 = bn_params(keys[5], planes)
    bn2 = bn_params(keys[6], planes)
    bn3 = bn_params(keys[7], out_channels)
    bnd = bn_params(keys[8], out_channels)

    out = jax.block_until_ready(
        resnet_bottleneck_block(x, conv1_w, bn1, conv2_w, bn2,
                                conv3_w, bn3, convd_w, bnd))

    # Pure-JAX f32 reference (same eval-mode BN semantics).
    s1, b1 = _fold_bn(*bn1)
    s2, b2 = _fold_bn(*bn2)
    s3, b3 = _fold_bn(*bn3)
    sd, bd = _fold_bn(*bnd)
    w1 = conv1_w[:, :, 0, 0].T
    w3 = conv3_w[:, :, 0, 0].T
    wd = convd_w[:, :, 0, 0].T
    w2 = jnp.transpose(conv2_w, (2, 3, 1, 0))    # (KH, KW, Cin, Cout)

    def ref(x_nchw):
        xh = jnp.transpose(x_nchw, (0, 2, 3, 1))
        t1 = jax.nn.relu(jnp.einsum('nhwc,cd->nhwd', xh, w1) * s1 + b1)
        t2 = jax.lax.conv_general_dilated(
            t1, w2, (1, 1), 'SAME',
            dimension_numbers=('NHWC', 'HWIO', 'NHWC'))
        t2 = jax.nn.relu(t2 * s2 + b2)
        t3 = jnp.einsum('nhwc,cd->nhwd', t2, w3) * s3 + b3
        idn = jnp.einsum('nhwc,cd->nhwd', xh, wd) * sd + bd
        return jnp.transpose(jax.nn.relu(t3 + idn), (0, 3, 1, 2))

    expected = ref(x)
    assert out.shape == (N, out_channels, H, W), out.shape
    max_err = float(jnp.max(jnp.abs(out - expected)))
    # bf16 MXU operands + bf16 kernel output vs f32 reference -> loose tolerance.
    assert jnp.allclose(out, expected, rtol=2e-2, atol=2e-2), max_err
    print("KERNEL_OK")
</pallas_src>

<mosaic_0001>
module attributes {stable_mosaic.version = 11 : i64} {
  func.func @bottleneck_kernel(%arg0: i32, %arg1: i32, %arg2: memref<1x1x10x16x128xbf16, #tpu.memory_space<vmem>>, %arg3: memref<128x128xbf16, #tpu.memory_space<vmem>>, %arg4: memref<1x128xf32, #tpu.memory_space<vmem>>, %arg5: memref<3x384x128xbf16, #tpu.memory_space<vmem>>, %arg6: memref<1x128xf32, #tpu.memory_space<vmem>>, %arg7: memref<256x128xbf16, #tpu.memory_space<vmem>>, %arg8: memref<1x128xf32, #tpu.memory_space<vmem>>, %arg9: memref<1x8x16x128xbf16, #tpu.memory_space<vmem>>, %arg10: memref<10x16x384xbf16, #tpu.memory_space<vmem>>) attributes {dimension_semantics = [#tpu.dimension_semantics<parallel>, #tpu.dimension_semantics<parallel>], iteration_bounds = array<i64: 2, 2>, scalar_prefetch = 0 : i64, scratch_operands = 1 : i64, tpu.core_type = #tpu.core_type<tc>, window_params = [{transform_indices = @transform_0, window_bounds = array<i64: 1, 1, 10, 16, 128>}, {pipeline_mode = #tpu.pipeline_mode<synchronous>, transform_indices = @transform_1, window_bounds = array<i64: 128, 128>}, {pipeline_mode = #tpu.pipeline_mode<synchronous>, transform_indices = @transform_2, window_bounds = array<i64: 1, 128>}, {pipeline_mode = #tpu.pipeline_mode<synchronous>, transform_indices = @transform_3, window_bounds = array<i64: 3, 384, 128>}, {pipeline_mode = #tpu.pipeline_mode<synchronous>, transform_indices = @transform_4, window_bounds = array<i64: 1, 128>}, {pipeline_mode = #tpu.pipeline_mode<synchronous>, transform_indices = @transform_5, window_bounds = array<i64: 256, 128>}, {pipeline_mode = #tpu.pipeline_mode<synchronous>, transform_indices = @transform_6, window_bounds = array<i64: 1, 128>}, {transform_indices = @transform_7, window_bounds = array<i64: 1, 8, 16, 128>}]} {
    %c0 = arith.constant 0 : index
    %c0_0 = arith.constant 0 : index
    %c0_1 = arith.constant 0 : index
    %c0_2 = arith.constant 0 : index
    %c0_3 = arith.constant 0 : index
    %0 = vector.load %arg2[%c0, %c0_0, %c0_1, %c0_2, %c0_3] : memref<1x1x10x16x128xbf16, #tpu.memory_space<vmem>>, vector<1x1x10x16x128xbf16>
    %1 = vector.shape_cast %0 : vector<1x1x10x16x128xbf16> to vector<10x16x128xbf16>
    %2 = vector.shape_cast %1 : vector<10x16x128xbf16> to vector<160x128xbf16>
    %c0_4 = arith.constant 0 : index
    %c0_5 = arith.constant 0 : index
    %3 = vector.load %arg3[%c0_4, %c0_5] : memref<128x128xbf16, #tpu.memory_space<vmem>>, vector<128x128xbf16>
    %cst = arith.constant dense<0.000000e+00> : vector<160x128xf32>
    %4 = tpu.matmul %2, %3, %cst {dimension_numbers = #tpu.dot_dimension_numbers<[1], [0], [0], [1], [0, 0, 1, 1], [], []>} : vector<160x128xbf16>, vector<128x128xbf16>, vector<160x128xf32> -> vector<160x128xf32>
    %c0_6 = arith.constant 0 : index
    %c0_7 = arith.constant 0 : index
    %5 = vector.load %arg4[%c0_6, %c0_7] : memref<1x128xf32, #tpu.memory_space<vmem>>, vector<1x128xf32>
    %6 = vector.broadcast %5 : vector<1x128xf32> to vector<160x128xf32>
    %7 = arith.addf %4, %6 : vector<160x128xf32>
    %cst_8 = arith.constant 0.000000e+00 : f32
    %8 = vector.broadcast %cst_8 : f32 to vector<160x128xf32>
    %9 = arith.maximumf %7, %8 : vector<160x128xf32>
    %10 = vector.shape_cast %9 : vector<160x128xf32> to vector<10x16x128xf32>
    %11 = arith.truncf %10 : vector<10x16x128xf32> to vector<10x16x128xbf16>
    %cst_9 = arith.constant 0.000000e+00 : bf16
    %12 = vector.broadcast %cst_9 : bf16 to vector<10x1x128xbf16>
    %13 = vector.extract_strided_slice %11 {offsets = [0, 0, 0], sizes = [10, 15, 128], strides = [1, 1, 1]} : vector<10x16x128xbf16> to vector<10x15x128xbf16>
    %14 = tpu.concatenate %12, %13 in 1 : vector<10x1x128xbf16>, vector<10x15x128xbf16> -> vector<10x16x128xbf16>
    %15 = vector.extract_strided_slice %11 {offsets = [0, 1, 0], sizes = [10, 15, 128], strides = [1, 1, 1]} : vector<10x16x128xbf16> to vector<10x15x128xbf16>
    %16 = tpu.concatenate %15, %12 in 1 : vector<10x15x128xbf16>, vector<10x1x128xbf16> -> vector<10x16x128xbf16>
    %c0_10 = arith.constant 0 : index
    %c0_11 = arith.constant 0 : index
    %c0_12 = arith.constant 0 : index
    %17 = vector.load %arg10[%c0_10, %c0_11, %c0_12] : memref<10x16x384xbf16, #tpu.memory_space<vmem>>, vector<10x16x128xbf16>
    tpu.vector_store %arg10[%c0_10, %c0_11, %c0_12], %14 {strides = array<i32>} : memref<10x16x384xbf16, #tpu.memory_space<vmem>>, vector<10x16x128xbf16>,
    %c0_13 = arith.constant 0 : index
    %c0_14 = arith.constant 0 : index
    %c128 = arith.constant 128 : index
    %18 = vector.load %arg10[%c0_13, %c0_14, %c128] : memref<10x16x384xbf16, #tpu.memory_space<vmem>>, vector<10x16x128xbf16>
    tpu.vector_store %arg10[%c0_13, %c0_14, %c128], %11 {strides = array<i32>} : memref<10x16x384xbf16, #tpu.memory_space<vmem>>, vector<10x16x128xbf16>,
    %c0_15 = arith.constant 0 : index
    %c0_16 = arith.constant 0 : index
    %c256 = arith.constant 256 : index
    %19 = vector.load %arg10[%c0_15, %c0_16, %c256] : memref<10x16x384xbf16, #tpu.memory_space<vmem>>, vector<10x16x128xbf16>
    tpu.vector_store %arg10[%c0_15, %c0_16, %c256], %16 {strides = array<i32>} : memref<10x16x384xbf16, #tpu.memory_space<vmem>>, vector<10x16x128xbf16>,
    %cst_17 = arith.constant 0.000000e+00 : bf16
    %20 = vector.broadcast %cst_17 : bf16 to vector<1x16x384xbf16>
    %c0_i32 = arith.constant 0 : i32
    %21 = arith.cmpi eq, %arg1, %c0_i32 : i32
    %22 = arith.extui %21 : i1 to i32
    %c0_i32_18 = arith.constant 0 : i32
    %23 = arith.cmpi ne, %22, %c0_i32_18 : i32
    scf.if %23 {
      %c0_52 = arith.constant 0 : index
      %c0_53 = arith.constant 0 : index
      %c0_54 = arith.constant 0 : index
      %65 = vector.load %arg10[%c0_52, %c0_53, %c0_54] : memref<10x16x384xbf16, #tpu.memory_space<vmem>>, vector<1x16x384xbf16>
      tpu.vector_store %arg10[%c0_52, %c0_53, %c0_54], %20 {strides = array<i32>} : memref<10x16x384xbf16, #tpu.memory_space<vmem>>, vector<1x16x384xbf16>,
    } else {
    }
    %c1_i32 = arith.constant 1 : i32
    %24 = arith.cmpi eq, %arg1, %c1_i32 : i32
    %25 = arith.extui %24 : i1 to i32
    %c0_i32_19 = arith.constant 0 : i32
    %26 = arith.cmpi ne, %25, %c0_i32_19 : i32
    scf.if %26 {
      %c9 = arith.constant 9 : index
      %c0_52 = arith.constant 0 : index
      %c0_53 = arith.constant 0 : index
      %65 = vector.load %arg10[%c9, %c0_52, %c0_53] : memref<10x16x384xbf16, #tpu.memory_space<vmem>>, vector<1x16x384xbf16>
      tpu.vector_store %arg10[%c9, %c0_52, %c0_53], %20 {strides = array<i32>} : memref<10x16x384xbf16, #tpu.memory_space<vmem>>, vector<1x16x384xbf16>,
    } else {
    }
    %c0_20 = arith.constant 0 : index
    %c0_21 = arith.constant 0 : index
    %c0_22 = arith.constant 0 : index
    %27 = vector.load %arg10[%c0_20, %c0_21, %c0_22] : memref<10x16x384xbf16, #tpu.memory_space<vmem>>, vector<8x16x384xbf16>
    %28 = vector.shape_cast %27 : vector<8x16x384xbf16> to vector<128x384xbf16>
    %c0_23 = arith.constant 0 : index
    %c0_24 = arith.constant 0 : index
    %c0_25 = arith.constant 0 : index
    %29 = vector.load %arg5[%c0_23, %c0_24, %c0_25] : memref<3x384x128xbf16, #tpu.memory_space<vmem>>, vector<1x384x128xbf16>
    %30 = vector.shape_cast %29 : vector<1x384x128xbf16> to vector<384x128xbf16>
    %cst_26 = arith.constant dense<0.000000e+00> : vector<128x128xf32>
    %31 = tpu.matmul %28, %30, %cst_26 {dimension_numbers = #tpu.dot_dimension_numbers<[1], [0], [0], [1], [0, 0, 1, 1], [], []>} : vector<128x384xbf16>, vector<384x128xbf16>, vector<128x128xf32> -> vector<128x128xf32>
    %c1 = arith.constant 1 : index
    %c0_27 = arith.constant 0 : index
    %c0_28 = arith.constant 0 : index
    %32 = vector.load %arg10[%c1, %c0_27, %c0_28] : memref<10x16x384xbf16, #tpu.memory_space<vmem>>, vector<8x16x384xbf16>
    %33 = vector.shape_cast %32 : vector<8x16x384xbf16> to vector<128x384xbf16>
    %c1_29 = arith.constant 1 : index
    %c0_30 = arith.constant 0 : index
    %c0_31 = arith.constant 0 : index
    %34 = vector.load %arg5[%c1_29, %c0_30, %c0_31] : memref<3x384x128xbf16, #tpu.memory_space<vmem>>, vector<1x384x128xbf16>
    %35 = vector.shape_cast %34 : vector<1x384x128xbf16> to vector<384x128xbf16>
    %cst_32 = arith.constant dense<0.000000e+00> : vector<128x128xf32>
    %36 = tpu.matmul %33, %35, %cst_32 {dimension_numbers = #tpu.dot_dimension_numbers<[1], [0], [0], [1], [0, 0, 1, 1], [], []>} : vector<128x384xbf16>, vector<384x128xbf16>, vector<128x128xf32> -> vector<128x128xf32>
    %37 = arith.addf %31, %36 : vector<128x128xf32>
    %c2 = arith.constant 2 : index
    %c0_33 = arith.constant 0 : index
    %c0_34 = arith.constant 0 : index
    %38 = vector.load %arg10[%c2, %c0_33, %c0_34] : memref<10x16x384xbf16, #tpu.memory_space<vmem>>, vector<8x16x384xbf16>
    %39 = vector.shape_cast %38 : vector<8x16x384xbf16> to vector<128x384xbf16>
    %c2_35 = arith.constant 2 : index
    %c0_36 = arith.constant 0 : index
    %c0_37 = arith.constant 0 : index
    %40 = vector.load %arg5[%c2_35, %c0_36, %c0_37] : memref<3x384x128xbf16, #tpu.memory_space<vmem>>, vector<1x384x128xbf16>
    %41 = vector.shape_cast %40 : vector<1x384x128xbf16> to vector<384x128xbf16>
    %cst_38 = arith.constant dense<0.000000e+00> : vector<128x128xf32>
    %42 = tpu.matmul %39, %41, %cst_38 {dimension_numbers = #tpu.dot_dimension_numbers<[1], [0], [0], [1], [0, 0, 1, 1], [], []>} : vector<128x384xbf16>, vector<384x128xbf16>, vector<128x128xf32> -> vector<128x128xf32>
    %43 = arith.addf %37, %42 : vector<128x128xf32>
    %c0_39 = arith.constant 0 : index
    %c0_40 = arith.constant 0 : index
    %44 = vector.load %arg6[%c0_39, %c0_40] : memref<1x128xf32, #tpu.memory_space<vmem>>, vector<1x128xf32>
    %45 = vector.broadcast %44 : vector<1x128xf32> to vector<128x128xf32>
    %46 = arith.addf %43, %45 : vector<128x128xf32>
    %cst_41 = arith.constant 0.000000e+00 : f32
    %47 = vector.broadcast %cst_41 : f32 to vector<128x128xf32>
    %48 = arith.maximumf %46, %47 : vector<128x128xf32>
    %49 = arith.truncf %48 : vector<128x128xf32> to vector<128x128xbf16>
    %50 = vector.extract_strided_slice %1 {offsets = [1, 0, 0], sizes = [8, 16, 128], strides = [1, 1, 1]} : vector<10x16x128xbf16> to vector<8x16x128xbf16>
    %51 = vector.shape_cast %50 : vector<8x16x128xbf16> to vector<128x128xbf16>
    %52 = tpu.concatenate %49, %51 in 1 : vector<128x128xbf16>, vector<128x128xbf16> -> vector<128x256xbf16>
    %c0_42 = arith.constant 0 : index
    %c0_43 = arith.constant 0 : index
    %53 = vector.load %arg7[%c0_42, %c0_43] : memref<256x128xbf16, #tpu.memory_space<vmem>>, vector<256x128xbf16>
    %cst_44 = arith.constant dense<0.000000e+00> : vector<128x128xf32>
    %54 = tpu.matmul %52, %53, %cst_44 {dimension_numbers = #tpu.dot_dimension_numbers<[1], [0], [0], [1], [0, 0, 1, 1], [], []>} : vector<128x256xbf16>, vector<256x128xbf16>, vector<128x128xf32> -> vector<128x128xf32>
    %c0_45 = arith.constant 0 : index
    %c0_46 = arith.constant 0 : index
    %55 = vector.load %arg8[%c0_45, %c0_46] : memref<1x128xf32, #tpu.memory_space<vmem>>, vector<1x128xf32>
    %56 = vector.broadcast %55 : vector<1x128xf32> to vector<128x128xf32>
    %57 = arith.addf %54, %56 : vector<128x128xf32>
    %cst_47 = arith.constant 0.000000e+00 : f32
    %58 = vector.broadcast %cst_47 : f32 to vector<128x128xf32>
    %59 = arith.maximumf %57, %58 : vector<128x128xf32>
    %60 = vector.shape_cast %59 : vector<128x128xf32> to vector<8x16x128xf32>
    %61 = arith.truncf %60 : vector<8x16x128xf32> to vector<8x16x128xbf16>
    %c0_48 = arith.constant 0 : index
    %c0_49 = arith.constant 0 : index
    %c0_50 = arith.constant 0 : index
    %c0_51 = arith.constant 0 : index
    %62 = vector.load %arg9[%c0_48, %c0_49, %c0_50, %c0_51] : memref<1x8x16x128xbf16, #tpu.memory_space<vmem>>, vector<1x8x16x128xbf16>
    %63 = vector.shape_cast %62 : vector<1x8x16x128xbf16> to vector<8x16x128xbf16>
    %64 = vector.shape_cast %61 : vector<8x16x128xbf16> to vector<1x8x16x128xbf16>
    tpu.vector_store %arg9[%c0_48, %c0_49, %c0_50, %c0_51], %64 {strides = array<i32>} : memref<1x8x16x128xbf16, #tpu.memory_space<vmem>>, vector<1x8x16x128xbf16>,
    return
  }
  func.func @transform_0(%arg0: i32, %arg1: i32) -> (i32, i32, i32, i32, i32) {
    %c0_i32 = arith.constant 0 : i32
    %c0_i32_0 = arith.constant 0 : i32
    %c0_i32_1 = arith.constant 0 : i32
    %c0_i32_2 = arith.constant 0 : i32
    return %arg0, %arg1, %c0_i32, %c0_i32_0, %c0_i32_1 : i32, i32, i32, i32, i32
  }
  func.func @transform_1(%arg0: i32, %arg1: i32) -> (i32, i32) {
    %c0_i32 = arith.constant 0 : i32
    %c0_i32_0 = arith.constant 0 : i32
    %c0_i32_1 = arith.constant 0 : i32
    return %c0_i32, %c0_i32_0 : i32, i32
  }
  func.func @transform_2(%arg0: i32, %arg1: i32) -> (i32, i32) {
    %c0_i32 = arith.constant 0 : i32
    %c0_i32_0 = arith.constant 0 : i32
    %c0_i32_1 = arith.constant 0 : i32
    return %c0_i32, %c0_i32_0 : i32, i32
  }
  func.func @transform_3(%arg0: i32, %arg1: i32) -> (i32, i32, i32) {
    %c0_i32 = arith.constant 0 : i32
    %c0_i32_0 = arith.constant 0 : i32
    %c0_i32_1 = arith.constant 0 : i32
    %c0_i32_2 = arith.constant 0 : i32
    return %c0_i32, %c0_i32_0, %c0_i32_1 : i32, i32, i32
  }
  func.func @transform_4(%arg0: i32, %arg1: i32) -> (i32, i32) {
    %c0_i32 = arith.constant 0 : i32
    %c0_i32_0 = arith.constant 0 : i32
    %c0_i32_1 = arith.constant 0 : i32
    return %c0_i32, %c0_i32_0 : i32, i32
  }
  func.func @transform_5(%arg0: i32, %arg1: i32) -> (i32, i32) {
    %c0_i32 = arith.constant 0 : i32
    %c0_i32_0 = arith.constant 0 : i32
    %c0_i32_1 = arith.constant 0 : i32
    return %c0_i32, %c0_i32_0 : i32, i32
  }
  func.func @transform_6(%arg0: i32, %arg1: i32) -> (i32, i32) {
    %c0_i32 = arith.constant 0 : i32
    %c0_i32_0 = arith.constant 0 : i32
    %c0_i32_1 = arith.constant 0 : i32
    return %c0_i32, %c0_i32_0 : i32, i32
  }
  func.func @transform_7(%arg0: i32, %arg1: i32) -> (i32, i32, i32, i32) {
    %c0_i32 = arith.constant 0 : i32
    %c0_i32_0 = arith.constant 0 : i32
    %c0_i32_1 = arith.constant 0 : i32
    return %arg0, %arg1, %c0_i32, %c0_i32_0 : i32, i32, i32, i32
  }
}

</mosaic_0001>

<bundles_post_ra>
// kernel: resnet_bottleneck_block.1
= control target key start
LH: loop header
LB: loop body
LE: loop exit
PB: predicated region body
PF: predicated region fallthrough
CT: control target
= control target key end

     0   :  { %s4147_s24 = smov 0   ;;  %s4149_s25 = smov 0   ;;  %s4767_s0 = inlined_call_operand.vmem [shape: bf16[2,2,10,16,128], index: 0, kind: input, shape index: {}]   ;;  %s4768_s1 = inlined_call_operand.vmem [shape: bf16[128,128], index: 1, kind: input, shape index: {}]   ;;  %s4769_s2 = inlined_call_operand.vmem [shape: f32[1,128], index: 2, kind: input, shape index: {}]   ;;  %s4770_s3 = inlined_call_operand.vmem [shape: bf16[3,384,128], index: 3, kind: input, shape index: {}]   ;;  %s4771_s4 = inlined_call_operand.vmem [shape: f32[1,128], index: 4, kind: input, shape index: {}]   ;;  %s4772_s5 = inlined_call_operand.vmem [shape: bf16[256,128], index: 5, kind: input, shape index: {}]   ;;  %s4773_s6 = inlined_call_operand.vmem [shape: f32[1,128], index: 6, kind: input, shape index: {}]   ;;  %s4774_s7 = inlined_call_operand.vmem [shape: bf16[2,16,16,128], index: 7, kind: output, shape index: {}]  }
   0x1   :  { %s4151_s26 = smov 0   ;;  %s4153_s27 = smov 0  }
   0x2   :  { %s4155_s28 = smov 0  }
   0x3 LB: > { %s26_s29 = sadd.s32 1, %s4095_s26  ;;  %s29_s30 = sadd.s32 1, %s4099_s27  ;;  %s4103_s28 = sphi %s4155_s28, %s17_s28   ;;  %s4099_s27 = sphi %s4153_s27, %s4782_s27   ;;  %s4095_s26 = sphi %s4151_s26, %s4781_s26   ;;  %s4091_s25 = sphi %s4149_s25, %s4780_s25   ;;  %s4087_s24 = sphi %s4147_s24, %s4779_s24  }
   0x4   : > { %p27_p0 = scmp.ge.s32.totalorder %s26_s29, 2  ;;  %p2967_p1 = scmp.ge.s32.totalorder %s4103_s28, 1 }
   0x5   : > { %p257_p2 = scmp.lt.s32.totalorder %s4103_s28, 5 }
   0x6   : > { %s4784_s29 = smov (%p27_p0, %s26_s29), 0  ;;  %s4786_s30 = smov (!%p27_p0, %s29_s30), %s4099_s27 }
   0x7   : > { %p258_p3 = pnand %p2967_p1, %p257_p2  ;;  %p31_p4 = scmp.ge.s32.totalorder %s4786_s30, 2 }
   0x8   : > { %p298_p5 = scmp.lt.s32.totalorder (!%p258_p3), %s4091_s25, 1  ;;  %s2969_s10 = sshll.u32 (!%p258_p3), %s4087_s24, 3 }
   0x9   : > { %s4788_s30 = smov (%p31_p4, %s4786_s30), 0  ;;  %261 = sbr.rel (%p258_p3) target bundleno = 1070 (0x42e), region = 48 }
   0xa   : > { %p310_p6 = scmp.lt.s32.totalorder (!%p258_p3), %s2969_s10, 15  ;;  %p300_p7 = scmp.lt.s32.totalorder (!%p258_p3), %s4087_s24, 1 }
   0xb   : > { %p3045_p8 = scmp.ne.s32.totalorder (!%p258_p3), %s4087_s24, 0 }
   0xe   : > { %v3802_v0 = vld [vmem:[%s4768_s1 + $0x38] sm:$0xff]  ;;  %v3801_v1 = vld [vmem:[%s4768_s1 + $0x30] sm:$0xff]  ;;  %s4790_s25 = smov (!%p298_p5, %s4091_s25), 1  ;;  %v3800_v2 = vld [vmem:[%s4768_s1 + $0x28] sm:$0xff]  ;;  %s4792_s10 = smov (!%p310_p6, %s2969_s10), 15  ;;  %vm696_vm0 = vcmask 1040384  }
   0xf   : > { %467 = vmatpush.bf16.msra.mxu0 %v3802_v0  ;;  %s2971_s13 = sshll.u32 %s4790_s25, 5  ;;  %s2970_s16 = sshll.u32 %s4792_s10, 1  ;;  %v3799_v3 = vld [vmem:[%s4768_s1 + $0x20] sm:$0xff]  ;;  %v3798_v4 = vld [vmem:[%s4768_s1 + $0x18] sm:$0xff]  ;;  %v3797_v5 = vld [vmem:[%s4768_s1 + $0x10] sm:$0xff]  ;;  %vm739_vm2 = vcmask 1047552  }
  0x10   : > { %s314_s17 = sadd.s32 %s2971_s13, %s2970_s16  ;;  %s4019_s12 = smul.u32 40, %s4790_s25  ;;  %v3796_v6 = vld [vmem:[%s4768_s1 + $0x8] sm:$0xff]  ;;  %v3795_v7 = vld [vmem:[%s4768_s1] sm:$0xff]  ;;  %vm697_vm1 = vsmask.f32 256 }
  0x11   : > { %s2972_s20 = sshll.u32 %s314_s17, 2  ;;  %v4248_v16 = vld [vmem:[%s4769_s2] ss:$0 sm:$0xff]  ;;  %vm740_vm3 = vsmask.f32 7424  ;;  %vm4258_vm4 = vmand %vm696_vm0, %vm697_vm1 }
  0x12   : > { %s4196_s23 = scalar_lea.vmem %s4774_s7, %s2972_s20  ;;  %vm4262_vm5 = vmand %vm739_vm2, %vm740_vm3 }
  0x13   : > { %468 = vmatpush.bf16.msra.mxu0 %v3801_v1  ;;  %s301_s8 = scalar_select %p300_p7, %s4087_s24, 1 }
  0x15   : > { %s4018_s10 = smul.u32 20, %s301_s8 }
  0x17   : > { %469 = vmatpush.bf16.msra.mxu0 %v3800_v2  ;;  %s304_s15 = sadd.s32 %s4019_s12, %s4018_s10 }
  0x18   : > { %s2968_s18 = sshll.u32 %s304_s15, 2 }
  0x19   : > { %s4214_s22 = scalar_lea.vmem %s4767_s0, %s2968_s18 }
  0x1a   : > { %v3785_v8 = vld [vmem:[%s4214_s22] sm:$0xff]  ;;  %v4218_v9 = vld [vmem:[%s4214_s22 + $0x8] sm:$0xff]  ;;  %v4222_v10 = vld [vmem:[%s4214_s22 + $0x10] sm:$0xff] }
  0x1b   : > { %470 = vmatpush.bf16.msra.mxu0 %v3799_v3  ;;  %v4226_v11 = vld [vmem:[%s4214_s22 + $0x18] sm:$0xff]  ;;  %v4230_v12 = vld [vmem:[%s4214_s22 + $0x20] sm:$0xff]  ;;  %v4234_v13 = vld [vmem:[%s4214_s22 + $0x28] sm:$0xff] }
  0x1c   : > { %v4238_v14 = vld [vmem:[%s4214_s22 + $0x30] sm:$0xff]  ;;  %v4242_v15 = vld [vmem:[%s4214_s22 + $0x38] sm:$0xff]  ;;  %v4251_v17 = vld [vmem:[%s4214_s22 + $0x40] sm:$0xff] }
  0x1d   : > { %v3794_v28 = vld [vmem:[%s4214_s22 + $0x48] sm:$0xff] }
  0x1f   : > { %471 = vmatpush.bf16.msra.mxu0 %v3798_v4 }
  0x23   : > { %472 = vmatpush.bf16.msra.mxu0 %v3797_v5 }
  0x27   : > { %473 = vmatpush.bf16.msra.mxu0 %v3796_v6 }
  0x2b   : > { %474 = vmatpush.bf16.msra.mxu0 %v3795_v7 }
  0x2e   : > { %475 = vmatmul.bf16.vlgmr.msra.gmra.mxu0 %v3785_v8 }
  0x3e   : > { %480 = vmatmul.bf16.gmra.mxu0 %v4218_v9 }
  0x4e   : > { %485 = vmatmul.bf16.gmra.mxu0 %v4222_v10 }
  0x5e   : > { %490 = vmatmul.bf16.gmra.mxu0 %v4226_v11 }
  0x6e   : > { %495 = vmatmul.bf16.gmra.mxu0 %v4230_v12 }
  0x7e   : > { %500 = vmatmul.bf16.gmra.mxu0 %v4234_v13 }
  0x8e   : > { %505 = vmatmul.bf16.gmra.mxu0 %v4238_v14 }
  0x9e   : > { %510 = vmatmul.bf16.gmra.mxu0 %v4242_v15 }
  0xab   : > { %v476_v18 = vpop.f32.mrf.mxu0 }
  0xac   : > { %v477_v19 = vadd.f32 %v4248_v16, %v476_v18 }
  0xae   : > { %v526_v20 = vmax.f32 %v477_v19, 0.0  ;;  %515 = vmatmul.bf16.gmra.mxu0 %v4251_v17 }
  0xb0   : > { %v546_v21 = vpack.c.bf16 %v526_v20, %v526_v20 }
  0xb2   : > { %842 = vst [vmem:[#allocation2 + $0x4] sm:$0xf] %v546_v21  ;;  %v586_v26 = vunpack.c.l.b16 %v546_v21 }
  0xb3   : > { %v478_v22 = vpop.f32.mrf.mxu0 }
  0xb4   : > { %v479_v23 = vadd.f32 %v4248_v16, %v478_v22 }
  0xb6   : > { %v527_v24 = vmax.f32 %v479_v23, 0.0 }
  0xb8   : > { %v547_v25 = vpack.c.bf16 %v527_v24, %v527_v24 }
  0xba   : > { %v587_v27 = vunpack.c.l.b16 %v547_v25  ;;  %843 = vst [vmem:[#allocation2 + $0x10] sm:$0xf] %v547_v25 }
  0xbb   : > { %v481_v29 = vpop.f32.mrf.mxu0 }
  0xbc   : > { %v606_v30 = vpack.c.b16 %v587_v27, %v586_v26  ;;  %v482_v31 = vadd.f32 %v4248_v16, %v481_v29 }
  0xbe   : > { %v617_v32 = vshrl.u32 %v606_v30, 16  ;;  %v620_v33 = vshll.u32 %v606_v30, 16  ;;  %v528_v34 = vmax.f32 %v482_v31, 0.0  ;;  %520 = vmatmul.bf16.gmra.mxu0 %v3794_v28 }
  0xc0   : > { %v619_v35 = vrot.slane %v617_v32, 7  ;;  %v709_v37 = vrot.slane %v620_v33, 1  ;;  %v548_v38 = vpack.c.bf16 %v528_v34, %v528_v34 }
  0xc2   : > { %v622_v40 = vor.u32 %v620_v33, %v619_v35  ;;  %v710_v41 = vor.u32 %v709_v37, %v617_v32  ;;  %844 = vst [vmem:[#allocation2 + $0x1c] sm:$0xf] %v548_v38  ;;  %v588_v56 = vunpack.c.l.b16 %v548_v38 }
  0xc3   : > { %v483_v42 = vpop.f32.mrf.mxu0 }
  0xc4   : > { %v699_v43 = vsel %vm4258_vm4, 0, %v622_v40  ;;  %v742_v44 = vsel %vm4262_vm5, %v710_v41, 0  ;;  %v484_v45 = vadd.f32 %v4248_v16, %v483_v42 }
  0xc5   : > { %v762_v46 = vunpack.c.l.b16 %v699_v43  ;;  %v763_v47 = vunpack.c.h.b16 %v699_v43  ;;  %v872_v48 = vunpack.c.l.b16 %v742_v44  ;;  %v873_v49 = vunpack.c.h.b16 %v742_v44 }
  0xc6   : > { %v529_v50 = vmax.f32 %v484_v45, 0.0 }
  0xc7   : > { %v782_v51 = vpack.c.b16 %v762_v46, %v762_v46  ;;  %v783_v52 = vpack.c.b16 %v763_v47, %v763_v47  ;;  %v892_v53 = vpack.c.b16 %v872_v48, %v872_v48  ;;  %v893_v54 = vpack.c.b16 %v873_v49, %v873_v49 }
  0xc8   : > { %v549_v55 = vpack.c.bf16 %v529_v50, %v529_v50 }
  0xc9   : > { %822 = vst [vmem:[#allocation2] sm:$0xf] %v782_v51 }
  0xca   : > { %823 = vst [vmem:[#allocation2 + $0xc] sm:$0xf] %v783_v52  ;;  %v589_v57 = vunpack.c.l.b16 %v549_v55 }
  0xcb   : > { %932 = vst [vmem:[#allocation2 + $0x8] sm:$0xf] %v892_v53  ;;  %v486_v58 = vpop.f32.mrf.mxu0 }
  0xcc   : > { %933 = vst [vmem:[#allocation2 + $0x14] sm:$0xf] %v893_v54  ;;  %v607_v59 = vpack.c.b16 %v589_v57, %v588_v56  ;;  %v487_v60 = vadd.f32 %v4248_v16, %v486_v58 }
  0xcd   : > { %845 = vst [vmem:[#allocation2 + $0x28] sm:$0xf] %v549_v55 }
  0xce   : > { %v624_v61 = vshrl.u32 %v607_v59, 16  ;;  %v627_v62 = vshll.u32 %v607_v59, 16  ;;  %v530_v63 = vmax.f32 %v487_v60, 0.0 }
  0xd0   : > { %v626_v0 = vrot.slane %v624_v61, 7  ;;  %v711_v1 = vrot.slane %v627_v62, 1  ;;  %v550_v2 = vpack.c.bf16 %v530_v63, %v530_v63 }
  0xd2   : > { %v629_v3 = vor.u32 %v627_v62, %v626_v0  ;;  %v712_v4 = vor.u32 %v711_v1, %v624_v61  ;;  %846 = vst [vmem:[#allocation2 + $0x34] sm:$0xf] %v550_v2  ;;  %v590_v28 = vunpack.c.l.b16 %v550_v2 }
  0xd3   : > { %v488_v5 = vpop.f32.mrf.mxu0 }
  0xd4   : > { %v700_v6 = vsel %vm4258_vm4, 0, %v629_v3  ;;  %v743_v7 = vsel %vm4262_vm5, %v712_v4, 0  ;;  %v489_v8 = vadd.f32 %v4248_v16, %v488_v5 }
  0xd5   : > { %v764_v18 = vunpack.c.l.b16 %v700_v6  ;;  %v765_v19 = vunpack.c.h.b16 %v700_v6  ;;  %v874_v20 = vunpack.c.l.b16 %v743_v7  ;;  %v875_v21 = vunpack.c.h.b16 %v743_v7 }
  0xd6   : > { %v531_v22 = vmax.f32 %v489_v8, 0.0 }
  0xd7   : > { %v784_v23 = vpack.c.b16 %v764_v18, %v764_v18  ;;  %v785_v24 = vpack.c.b16 %v765_v19, %v765_v19  ;;  %v894_v25 = vpack.c.b16 %v874_v20, %v874_v20  ;;  %v895_v26 = vpack.c.b16 %v875_v21, %v875_v21 }
  0xd8   : > { %v551_v27 = vpack.c.bf16 %v531_v22, %v531_v22 }
  0xd9   : > { %824 = vst [vmem:[#allocation2 + $0x18] sm:$0xf] %v784_v23 }
  0xda   : > { %825 = vst [vmem:[#allocation2 + $0x24] sm:$0xf] %v785_v24  ;;  %v591_v29 = vunpack.c.l.b16 %v551_v27 }
  0xdb   : > { %934 = vst [vmem:[#allocation2 + $0x20] sm:$0xf] %v894_v25  ;;  %v491_v30 = vpop.f32.mrf.mxu0 }
  0xdc   : > { %935 = vst [vmem:[#allocation2 + $0x2c] sm:$0xf] %v895_v26  ;;  %v608_v31 = vpack.c.b16 %v591_v29, %v590_v28  ;;  %v492_v32 = vadd.f32 %v4248_v16, %v491_v30 }
  0xdd   : > { %847 = vst [vmem:[#allocation2 + $0x40] sm:$0xf] %v551_v27 }
  0xde   : > { %v631_v33 = vshrl.u32 %v608_v31, 16  ;;  %v634_v34 = vshll.u32 %v608_v31, 16  ;;  %v532_v35 = vmax.f32 %v492_v32, 0.0 }
  0xe0   : > { %v633_v37 = vrot.slane %v631_v33, 7  ;;  %v713_v38 = vrot.slane %v634_v34, 1  ;;  %v552_v40 = vpack.c.bf16 %v532_v35, %v532_v35 }
  0xe2   : > { %v636_v41 = vor.u32 %v634_v34, %v633_v37  ;;  %v714_v42 = vor.u32 %v713_v38, %v631_v33  ;;  %848 = vst [vmem:[#allocation2 + $0x4c] sm:$0xf] %v552_v40  ;;  %v592_v57 = vunpack.c.l.b16 %v552_v40 }
  0xe3   : > { %v493_v43 = vpop.f32.mrf.mxu0 }
  0xe4   : > { %v701_v44 = vsel %vm4258_vm4, 0, %v636_v41  ;;  %v744_v45 = vsel %vm4262_vm5, %v714_v42, 0  ;;  %v494_v46 = vadd.f32 %v4248_v16, %v493_v43 }
  0xe5   : > { %v766_v47 = vunpack.c.l.b16 %v701_v44  ;;  %v767_v48 = vunpack.c.h.b16 %v701_v44  ;;  %v876_v49 = vunpack.c.l.b16 %v744_v45  ;;  %v877_v50 = vunpack.c.h.b16 %v744_v45 }
  0xe6   : > { %v533_v51 = vmax.f32 %v494_v46, 0.0 }
  0xe7   : > { %v786_v52 = vpack.c.b16 %v766_v47, %v766_v47  ;;  %v787_v53 = vpack.c.b16 %v767_v48, %v767_v48  ;;  %v896_v54 = vpack.c.b16 %v876_v49, %v876_v49  ;;  %v897_v55 = vpack.c.b16 %v877_v50, %v877_v50 }
  0xe8   : > { %v553_v56 = vpack.c.bf16 %v533_v51, %v533_v51 }
  0xe9   : > { %826 = vst [vmem:[#allocation2 + $0x30] sm:$0xf] %v786_v52 }
  0xea   : > { %827 = vst [vmem:[#allocation2 + $0x3c] sm:$0xf] %v787_v53  ;;  %v593_v58 = vunpack.c.l.b16 %v553_v56 }
  0xeb   : > { %936 = vst [vmem:[#allocation2 + $0x38] sm:$0xf] %v896_v54  ;;  %v496_v59 = vpop.f32.mrf.mxu0 }
  0xec   : > { %937 = vst [vmem:[#allocation2 + $0x44] sm:$0xf] %v897_v55  ;;  %v609_v60 = vpack.c.b16 %v593_v58, %v592_v57  ;;  %v497_v61 = vadd.f32 %v4248_v16, %v496_v59 }
  0xed   : > { %849 = vst [vmem:[#allocation2 + $0x58] sm:$0xf] %v553_v56 }
  0xee   : > { %v638_v62 = vshrl.u32 %v609_v60, 16  ;;  %v641_v63 = vshll.u32 %v609_v60, 16  ;;  %v534_v0 = vmax.f32 %v497_v61, 0.0 }
  0xf0   : > { %v640_v1 = vrot.slane %v638_v62, 7  ;;  %v715_v2 = vrot.slane %v641_v63, 1  ;;  %v554_v3 = vpack.c.bf16 %v534_v0, %v534_v0 }
  0xf2   : > { %v643_v4 = vor.u32 %v641_v63, %v640_v1  ;;  %v716_v5 = vor.u32 %v715_v2, %v638_v62  ;;  %850 = vst [vmem:[#allocation2 + $0x64] sm:$0xf] %v554_v3  ;;  %v594_v29 = vunpack.c.l.b16 %v554_v3 }
  0xf3   : > { %v498_v6 = vpop.f32.mrf.mxu0 }
  0xf4   : > { %v702_v7 = vsel %vm4258_vm4, 0, %v643_v4  ;;  %v745_v8 = vsel %vm4262_vm5, %v716_v5, 0  ;;  %v499_v18 = vadd.f32 %v4248_v16, %v498_v6 }
  0xf5   : > { %v768_v19 = vunpack.c.l.b16 %v702_v7  ;;  %v769_v20 = vunpack.c.h.b16 %v702_v7  ;;  %v878_v21 = vunpack.c.l.b16 %v745_v8  ;;  %v879_v22 = vunpack.c.h.b16 %v745_v8 }
  0xf6   : > { %v535_v23 = vmax.f32 %v499_v18, 0.0 }
  0xf7   : > { %v788_v24 = vpack.c.b16 %v768_v19, %v768_v19  ;;  %v789_v25 = vpack.c.b16 %v769_v20, %v769_v20  ;;  %v898_v26 = vpack.c.b16 %v878_v21, %v878_v21  ;;  %v899_v27 = vpack.c.b16 %v879_v22, %v879_v22 }
  0xf8   : > { %v555_v28 = vpack.c.bf16 %v535_v23, %v535_v23 }
  0xf9   : > { %828 = vst [vmem:[#allocation2 + $0x48] sm:$0xf] %v788_v24 }
  0xfa   : > { %829 = vst [vmem:[#allocation2 + $0x54] sm:$0xf] %v789_v25  ;;  %v595_v30 = vunpack.c.l.b16 %v555_v28 }
  0xfb   : > { %938 = vst [vmem:[#allocation2 + $0x50] sm:$0xf] %v898_v26  ;;  %v501_v31 = vpop.f32.mrf.mxu0 }
  0xfc   : > { %939 = vst [vmem:[#allocation2 + $0x5c] sm:$0xf] %v899_v27  ;;  %v610_v32 = vpack.c.b16 %v595_v30, %v594_v29  ;;  %v502_v33 = vadd.f32 %v4248_v16, %v501_v31 }
  0xfd   : > { %851 = vst [vmem:[#allocation2 + $0x70] sm:$0xf] %v555_v28 }
  0xfe   : > { %v645_v34 = vshrl.u32 %v610_v32, 16  ;;  %v648_v35 = vshll.u32 %v610_v32, 16  ;;  %v536_v37 = vmax.f32 %v502_v33, 0.0 }
 0x100   : > { %v647_v38 = vrot.slane %v645_v34, 7  ;;  %v717_v40 = vrot.slane %v648_v35, 1  ;;  %v556_v41 = vpack.c.bf16 %v536_v37, %v536_v37 }
 0x102   : > { %v650_v42 = vor.u32 %v648_v35, %v647_v38  ;;  %v718_v43 = vor.u32 %v717_v40, %v645_v34  ;;  %852 = vst [vmem:[#allocation2 + $0x7c] sm:$0xf] %v556_v41  ;;  %v596_v58 = vunpack.c.l.b16 %v556_v41 }
 0x103   : > { %v503_v44 = vpop.f32.mrf.mxu0 }
 0x104   : > { %v703_v45 = vsel %vm4258_vm4, 0, %v650_v42  ;;  %v746_v46 = vsel %vm4262_vm5, %v718_v43, 0  ;;  %v504_v47 = vadd.f32 %v4248_v16, %v503_v44 }
 0x105   : > { %v770_v48 = vunpack.c.l.b16 %v703_v45  ;;  %v771_v49 = vunpack.c.h.b16 %v703_v45  ;;  %v880_v50 = vunpack.c.l.b16 %v746_v46  ;;  %v881_v51 = vunpack.c.h.b16 %v746_v46 }
 0x106   : > { %v537_v52 = vmax.f32 %v504_v47, 0.0 }
 0x107   : > { %v790_v53 = vpack.c.b16 %v770_v48, %v770_v48  ;;  %v791_v54 = vpack.c.b16 %v771_v49, %v771_v49  ;;  %v900_v55 = vpack.c.b16 %v880_v50, %v880_v50  ;;  %v901_v56 = vpack.c.b16 %v881_v51, %v881_v51 }
 0x108   : > { %v557_v57 = vpack.c.bf16 %v537_v52, %v537_v52 }
 0x109   : > { %830 = vst [vmem:[#allocation2 + $0x60] sm:$0xf] %v790_v53 }
 0x10a   : > { %831 = vst [vmem:[#allocation2 + $0x6c] sm:$0xf] %v791_v54  ;;  %v597_v59 = vunpack.c.l.b16 %v557_v57 }
 0x10b   : > { %940 = vst [vmem:[#allocation2 + $0x68] sm:$0xf] %v900_v55  ;;  %v506_v60 = vpop.f32.mrf.mxu0 }
 0x10c   : > { %941 = vst [vmem:[#allocation2 + $0x74] sm:$0xf] %v901_v56  ;;  %v611_v61 = vpack.c.b16 %v597_v59, %v596_v58  ;;  %v507_v62 = vadd.f32 %v4248_v16, %v506_v60 }
 0x10d   : > { %853 = vst [vmem:[#allocation2 + $0x88] sm:$0xf] %v557_v57 }
 0x10e   : > { %v652_v63 = vshrl.u32 %v611_v61, 16  ;;  %v655_v0 = vshll.u32 %v611_v61, 16  ;;  %v538_v1 = vmax.f32 %v507_v62, 0.0 }
 0x110   : > { %v654_v2 = vrot.slane %v652_v63, 7  ;;  %v719_v3 = vrot.slane %v655_v0, 1  ;;  %v558_v4 = vpack.c.bf16 %v538_v1, %v538_v1 }
 0x112   : > { %v657_v5 = vor.u32 %v655_v0, %v654_v2  ;;  %v720_v6 = vor.u32 %v719_v3, %v652_v63  ;;  %854 = vst [vmem:[#allocation2 + $0x94] sm:$0xf] %v558_v4  ;;  %v598_v30 = vunpack.c.l.b16 %v558_v4 }
 0x113   : > { %v508_v7 = vpop.f32.mrf.mxu0 }
 0x114   : > { %v704_v8 = vsel %vm4258_vm4, 0, %v657_v5  ;;  %v747_v18 = vsel %vm4262_vm5, %v720_v6, 0  ;;  %v509_v19 = vadd.f32 %v4248_v16, %v508_v7 }
 0x115   : > { %v772_v20 = vunpack.c.l.b16 %v704_v8  ;;  %v773_v21 = vunpack.c.h.b16 %v704_v8  ;;  %v882_v22 = vunpack.c.l.b16 %v747_v18  ;;  %v883_v23 = vunpack.c.h.b16 %v747_v18 }
 0x116   : > { %v539_v24 = vmax.f32 %v509_v19, 0.0 }
 0x117   : > { %v792_v25 = vpack.c.b16 %v772_v20, %v772_v20  ;;  %v793_v26 = vpack.c.b16 %v773_v21, %v773_v21  ;;  %v902_v27 = vpack.c.b16 %v882_v22, %v882_v22  ;;  %v903_v28 = vpack.c.b16 %v883_v23, %v883_v23 }
 0x118   : > { %v559_v29 = vpack.c.bf16 %v539_v24, %v539_v24 }
 0x119   : > { %832 = vst [vmem:[#allocation2 + $0x78] sm:$0xf] %v792_v25 }
 0x11a   : > { %833 = vst [vmem:[#allocation2 + $0x84] sm:$0xf] %v793_v26  ;;  %v599_v31 = vunpack.c.l.b16 %v559_v29 }
 0x11b   : > { %942 = vst [vmem:[#allocation2 + $0x80] sm:$0xf] %v902_v27  ;;  %v511_v32 = vpop.f32.mrf.mxu0 }
 0x11c   : > { %943 = vst [vmem:[#allocation2 + $0x8c] sm:$0xf] %v903_v28  ;;  %v612_v33 = vpack.c.b16 %v599_v31, %v598_v30  ;;  %v512_v34 = vadd.f32 %v4248_v16, %v511_v32 }
 0x11d   : > { %855 = vst [vmem:[#allocation2 + $0xa0] sm:$0xf] %v559_v29 }
 0x11e   : > { %v659_v35 = vshrl.u32 %v612_v33, 16  ;;  %v662_v37 = vshll.u32 %v612_v33, 16  ;;  %v540_v38 = vmax.f32 %v512_v34, 0.0 }
 0x120   : > { %v661_v40 = vrot.slane %v659_v35, 7  ;;  %v721_v41 = vrot.slane %v662_v37, 1  ;;  %v560_v42 = vpack.c.bf16 %v540_v38, %v540_v38 }
 0x122   : > { %v664_v43 = vor.u32 %v662_v37, %v661_v40  ;;  %v722_v44 = vor.u32 %v721_v41, %v659_v35  ;;  %856 = vst [vmem:[#allocation2 + $0xac] sm:$0xf] %v560_v42  ;;  %v600_v59 = vunpack.c.l.b16 %v560_v42 }
 0x123   : > { %v513_v45 = vpop.f32.mrf.mxu0 }
 0x124   : > { %v705_v46 = vsel %vm4258_vm4, 0, %v664_v43  ;;  %v748_v47 = vsel %vm4262_vm5, %v722_v44, 0  ;;  %v514_v48 = vadd.f32 %v4248_v16, %v513_v45 }
 0x125   : > { %v774_v49 = vunpack.c.l.b16 %v705_v46  ;;  %v775_v50 = vunpack.c.h.b16 %v705_v46  ;;  %v884_v51 = vunpack.c.l.b16 %v748_v47  ;;  %v885_v52 = vunpack.c.h.b16 %v748_v47 }
 0x126   : > { %v541_v53 = vmax.f32 %v514_v48, 0.0 }
 0x127   : > { %v794_v54 = vpack.c.b16 %v774_v49, %v774_v49  ;;  %v795_v55 = vpack.c.b16 %v775_v50, %v775_v50  ;;  %v904_v56 = vpack.c.b16 %v884_v51, %v884_v51  ;;  %v905_v57 = vpack.c.b16 %v885_v52, %v885_v52 }
 0x128   : > { %v561_v58 = vpack.c.bf16 %v541_v53, %v541_v53 }
 0x129   : > { %834 = vst [vmem:[#allocation2 + $0x90] sm:$0xf] %v794_v54 }
 0x12a   : > { %835 = vst [vmem:[#allocation2 + $0x9c] sm:$0xf] %v795_v55  ;;  %v601_v60 = vunpack.c.l.b16 %v561_v58 }
 0x12b   : > { %944 = vst [vmem:[#allocation2 + $0x98] sm:$0xf] %v904_v56  ;;  %v516_v61 = vpop.f32.mrf.mxu0 }
 0x12c   : > { %945 = vst [vmem:[#allocation2 + $0xa4] sm:$0xf] %v905_v57  ;;  %v613_v62 = vpack.c.b16 %v601_v60, %v600_v59  ;;  %v517_v63 = vadd.f32 %v4248_v16, %v516_v61 }
 0x12d   : > { %857 = vst [vmem:[#allocation2 + $0xb8] sm:$0xf] %v561_v58 }
 0x12e   : > { %v666_v0 = vshrl.u32 %v613_v62, 16  ;;  %v669_v1 = vshll.u32 %v613_v62, 16  ;;  %v542_v2 = vmax.f32 %v517_v63, 0.0 }
 0x130   : > { %v668_v3 = vrot.slane %v666_v0, 7  ;;  %v723_v4 = vrot.slane %v669_v1, 1  ;;  %v562_v5 = vpack.c.bf16 %v542_v2, %v542_v2 }
 0x132   : > { %v671_v6 = vor.u32 %v669_v1, %v668_v3  ;;  %v724_v7 = vor.u32 %v723_v4, %v666_v0  ;;  %858 = vst [vmem:[#allocation2 + $0xc4] sm:$0xf] %v562_v5  ;;  %v602_v31 = vunpack.c.l.b16 %v562_v5 }
 0x133   : > { %v518_v8 = vpop.f32.mrf.mxu0 }
 0x134   : > { %v706_v18 = vsel %vm4258_vm4, 0, %v671_v6  ;;  %v749_v19 = vsel %vm4262_vm5, %v724_v7, 0  ;;  %v519_v20 = vadd.f32 %v4248_v16, %v518_v8 }
 0x135   : > { %v776_v21 = vunpack.c.l.b16 %v706_v18  ;;  %v777_v22 = vunpack.c.h.b16 %v706_v18  ;;  %v886_v23 = vunpack.c.l.b16 %v749_v19  ;;  %v887_v24 = vunpack.c.h.b16 %v749_v19 }
 0x136   : > { %v543_v25 = vmax.f32 %v519_v20, 0.0 }
 0x137   : > { %v796_v26 = vpack.c.b16 %v776_v21, %v776_v21  ;;  %v797_v27 = vpack.c.b16 %v777_v22, %v777_v22  ;;  %v906_v28 = vpack.c.b16 %v886_v23, %v886_v23  ;;  %v907_v29 = vpack.c.b16 %v887_v24, %v887_v24 }
 0x138   : > { %v563_v30 = vpack.c.bf16 %v543_v25, %v543_v25 }
 0x139   : > { %836 = vst [vmem:[#allocation2 + $0xa8] sm:$0xf] %v796_v26 }
 0x13a   : > { %837 = vst [vmem:[#allocation2 + $0xb4] sm:$0xf] %v797_v27  ;;  %v603_v32 = vunpack.c.l.b16 %v563_v30 }
 0x13b   : > { %946 = vst [vmem:[#allocation2 + $0xb0] sm:$0xf] %v906_v28  ;;  %v521_v33 = vpop.f32.mrf.mxu0 }
 0x13c   : > { %947 = vst [vmem:[#allocation2 + $0xbc] sm:$0xf] %v907_v29  ;;  %v614_v34 = vpack.c.b16 %v603_v32, %v602_v31  ;;  %v522_v35 = vadd.f32 %v4248_v16, %v521_v33 }
 0x13d   : > { %859 = vst [vmem:[#allocation2 + $0xd0] sm:$0xf] %v563_v30 }
 0x13e   : > { %v673_v37 = vshrl.u32 %v614_v34, 16  ;;  %v676_v38 = vshll.u32 %v614_v34, 16  ;;  %v544_v40 = vmax.f32 %v522_v35, 0.0 }
 0x140   : > { %v675_v41 = vrot.slane %v673_v37, 7  ;;  %v725_v42 = vrot.slane %v676_v38, 1  ;;  %v564_v43 = vpack.c.bf16 %v544_v40, %v544_v40 }
 0x142   : > { %v678_v44 = vor.u32 %v676_v38, %v675_v41  ;;  %v726_v45 = vor.u32 %v725_v42, %v673_v37  ;;  %860 = vst [vmem:[#allocation2 + $0xdc] sm:$0xf] %v564_v43  ;;  %v604_v60 = vunpack.c.l.b16 %v564_v43 }
 0x143   : > { %v523_v46 = vpop.f32.mrf.mxu0 }
 0x144   : > { %v707_v47 = vsel %vm4258_vm4, 0, %v678_v44  ;;  %v750_v48 = vsel %vm4262_vm5, %v726_v45, 0  ;;  %v524_v49 = vadd.f32 %v4248_v16, %v523_v46 }
 0x145   : > { %v778_v50 = vunpack.c.l.b16 %v707_v47  ;;  %v779_v51 = vunpack.c.h.b16 %v707_v47  ;;  %v888_v52 = vunpack.c.l.b16 %v750_v48  ;;  %v889_v53 = vunpack.c.h.b16 %v750_v48 }
 0x146   : > { %v545_v54 = vmax.f32 %v524_v49, 0.0 }
 0x147   : > { %v798_v55 = vpack.c.b16 %v778_v50, %v778_v50  ;;  %v799_v56 = vpack.c.b16 %v779_v51, %v779_v51  ;;  %v908_v57 = vpack.c.b16 %v888_v52, %v888_v52  ;;  %v909_v58 = vpack.c.b16 %v889_v53, %v889_v53 }
 0x148   : > { %v565_v59 = vpack.c.bf16 %v545_v54, %v545_v54 }
 0x149   : > { %838 = vst [vmem:[#allocation2 + $0xc0] sm:$0xf] %v798_v55 }
 0x14a   : > { %839 = vst [vmem:[#allocation2 + $0xcc] sm:$0xf] %v799_v56  ;;  %v605_v61 = vunpack.c.l.b16 %v565_v59 }
 0x14b   : > { %948 = vst [vmem:[#allocation2 + $0xc8] sm:$0xf] %v908_v57 }
 0x14c   : > { %949 = vst [vmem:[#allocation2 + $0xd4] sm:$0xf] %v909_v58  ;;  %v615_v62 = vpack.c.b16 %v605_v61, %v604_v60 }
 0x14d   : > { %861 = vst [vmem:[#allocation2 + $0xe8] sm:$0xf] %v565_v59 }
 0x14e   : > { %v680_v63 = vshrl.u32 %v615_v62, 16  ;;  %v683_v16 = vshll.u32 %v615_v62, 16 }
 0x150   : > { %v682_v0 = vrot.slane %v680_v63, 7  ;;  %v727_v1 = vrot.slane %v683_v16, 1 }
 0x152   : > { %v685_v2 = vor.u32 %v683_v16, %v682_v0  ;;  %v728_v3 = vor.u32 %v727_v1, %v680_v63 }
 0x154   : > { %v708_v4 = vsel %vm4258_vm4, 0, %v685_v2  ;;  %v751_v5 = vsel %vm4262_vm5, %v728_v3, 0 }
 0x155   : > { %v780_v6 = vunpack.c.l.b16 %v708_v4  ;;  %v781_v7 = vunpack.c.h.b16 %v708_v4  ;;  %v890_v8 = vunpack.c.l.b16 %v751_v5  ;;  %v891_v18 = vunpack.c.h.b16 %v751_v5 }
 0x157   : > { %v800_v19 = vpack.c.b16 %v780_v6, %v780_v6  ;;  %v801_v20 = vpack.c.b16 %v781_v7, %v781_v7  ;;  %v910_v21 = vpack.c.b16 %v890_v8, %v890_v8  ;;  %v911_v22 = vpack.c.b16 %v891_v18, %v891_v18 }
 0x158   : > { %955 = sbr.rel (%p3045_p8) target bundleno = 354 (0x162), region = 52 }
 0x159   : > { %840 = vst [vmem:[#allocation2 + $0xd8] sm:$0xf] %v800_v19 }
 0x15a   : > { %841 = vst [vmem:[#allocation2 + $0xe4] sm:$0xf] %v801_v20 }
 0x15b   : > { %950 = vst [vmem:[#allocation2 + $0xe0] sm:$0xf] %v910_v21 }
 0x15c   : > { %951 = vst [vmem:[#allocation2 + $0xec] sm:$0xf] %v911_v22 }
 0x15d   : > { %v4105_v36 = vmov 0  }
 0x15e   : > { %956 = vst [vmem:[#allocation2] sm:$0xff] %v4105_v36 }
 0x15f   : > { %957 = vst [vmem:[#allocation2 + $0x8] sm:$0xf] %v4105_v36 }
 0x160   : > { %958 = vst [vmem:[#allocation2 + $0xc] sm:$0xff] %v4105_v36 }
 0x161   : > { %959 = vst [vmem:[#allocation2 + $0x14] sm:$0xf] %v4105_v36 }
 0x162 PF: > { %p3046_p9 = scmp.ne.s32.totalorder %s4087_s24, 1 }
 0x164   : > { %963 = sbr.rel (%p3046_p9) target bundleno = 366 (0x16e), region = 56 }
 0x169   : > { %v4106_v39 = vmov 0  }
 0x16a   : > { %965 = vst [vmem:[#allocation2 + $0xd8] sm:$0xff] %v4106_v39 }
 0x16b   : > { %966 = vst [vmem:[#allocation2 + $0xe0] sm:$0xf] %v4106_v39 }
 0x16c   : > { %967 = vst [vmem:[#allocation2 + $0xe4] sm:$0xff] %v4106_v39 }
 0x16d   : > { %968 = vst [vmem:[#allocation2 + $0xec] sm:$0xf] %v4106_v39 }
 0x16e PF: > { %v3882_v23 = vld [vmem:[%s4770_s3 + $0xf8] sm:$0xff]  ;;  %v3881_v26 = vld [vmem:[%s4770_s3 + $0xf0] sm:$0xff]  ;;  %v3880_v29 = vld [vmem:[%s4770_s3 + $0xe8] sm:$0xff] }
 0x16f   : > { %v3890_v24 = vld [vmem:[%s4770_s3 + $0x138] sm:$0xff]  ;;  %1403 = vmatpush.bf16.msra.mxu1 %v3882_v23  ;;  %v3889_v27 = vld [vmem:[%s4770_s3 + $0x130] sm:$0xff]  ;;  %v3888_v30 = vld [vmem:[%s4770_s3 + $0x128] sm:$0xff] }
 0x170   : > { %v3898_v25 = vld [vmem:[%s4770_s3 + $0x178] sm:$0xff]  ;;  %1452 = vmatpush.bf16.msra.mxu2 %v3890_v24  ;;  %v3897_v28 = vld [vmem:[%s4770_s3 + $0x170] sm:$0xff]  ;;  %v3896_v31 = vld [vmem:[%s4770_s3 + $0x168] sm:$0xff] }
 0x171   : > { %1501 = vmatpush.bf16.msra.mxu3 %v3898_v25  ;;  %v3879_v32 = vld [vmem:[%s4770_s3 + $0xe0] sm:$0xff]  ;;  %v3878_v35 = vld [vmem:[%s4770_s3 + $0xd8] sm:$0xff]  ;;  %v3877_v40 = vld [vmem:[%s4770_s3 + $0xd0] sm:$0xff] }
 0x172   : > { %v3887_v33 = vld [vmem:[%s4770_s3 + $0x120] sm:$0xff]  ;;  %v3886_v37 = vld [vmem:[%s4770_s3 + $0x118] sm:$0xff]  ;;  %v3885_v41 = vld [vmem:[%s4770_s3 + $0x110] sm:$0xff] }
 0x173   : > { %1404 = vmatpush.bf16.msra.mxu1 %v3881_v26  ;;  %v3895_v34 = vld [vmem:[%s4770_s3 + $0x160] sm:$0xff]  ;;  %v3894_v38 = vld [vmem:[%s4770_s3 + $0x158] sm:$0xff]  ;;  %v3893_v42 = vld [vmem:[%s4770_s3 + $0x150] sm:$0xff] }
 0x174   : > { %1453 = vmatpush.bf16.msra.mxu2 %v3889_v27  ;;  %v3876_v43 = vld [vmem:[%s4770_s3 + $0xc8] sm:$0xff]  ;;  %v3875_v46 = vld [vmem:[%s4770_s3 + $0xc0] sm:$0xff]  ;;  %v3097_v49 = vld [vmem:[#allocation2 + $0x18] sm:$0xf] }
 0x175   : > { %1502 = vmatpush.bf16.msra.mxu3 %v3897_v28  ;;  %v3884_v44 = vld [vmem:[%s4770_s3 + $0x108] sm:$0xff]  ;;  %v3883_v47 = vld [vmem:[%s4770_s3 + $0x100] sm:$0xff]  ;;  %v3851_v51 = vld [vmem:[#allocation2 + $0x1c] sm:$0xf] }
 0x176   : > { %v3892_v45 = vld [vmem:[%s4770_s3 + $0x148] sm:$0xff]  ;;  %v3891_v48 = vld [vmem:[%s4770_s3 + $0x140] sm:$0xff]  ;;  %v3842_v53 = vld [vmem:[%s4770_s3 + $0x78] sm:$0xff] }
 0x177   : > { %1405 = vmatpush.bf16.msra.mxu1 %v3880_v29  ;;  %v3852_v50 = vld [vmem:[#allocation2 + $0x20] sm:$0xf0]  ;;  %v3099_v52 = vld [vmem:[#allocation2 + $0x24] sm:$0xf0]  ;;  %v3105_v54 = vld [vmem:[#allocation2 + $0x20] sm:$0xf] }
 0x178   : > { %1454 = vmatpush.bf16.msra.mxu2 %v3888_v30  ;;  %v3853_v55 = vld [vmem:[#allocation2 + $0x28] sm:$0xf0]  ;;  %v3834_v56 = vld [vmem:[%s4770_s3 + $0x38] sm:$0xff]  ;;  %v3098_v57 = vor.u32 %v3852_v50, %v3097_v49  ;;  %v3102_v58 = vor.u32 %v3851_v51, %v3099_v52  ;;  %v3841_v60 = vld [vmem:[%s4770_s3 + $0x70] sm:$0xff] }
 0x179   : > { %1503 = vmatpush.bf16.msra.mxu3 %v3896_v31  ;;  %v3106_v59 = vor.u32 %v3853_v55, %v3105_v54  ;;  %v3833_v61 = vld [vmem:[%s4770_s3 + $0x30] sm:$0xff]  ;;  %v3840_v62 = vld [vmem:[%s4770_s3 + $0x68] sm:$0xff]  ;;  %v3855_v0 = vld [vmem:[#allocation2 + $0x38] sm:$0xf0] }
 0x17a   : > { %v3832_v63 = vld [vmem:[%s4770_s3 + $0x28] sm:$0xff]  ;;  %v3109_v16 = vld [vmem:[#allocation2 + $0x30] sm:$0xf]  ;;  %v3854_v1 = vld [vmem:[#allocation2 + $0x34] sm:$0xf] }
 0x17b   : > { %1406 = vmatpush.bf16.msra.mxu1 %v3879_v32  ;;  %v3111_v2 = vld [vmem:[#allocation2 + $0x3c] sm:$0xf0]  ;;  %v3117_v3 = vld [vmem:[#allocation2 + $0x38] sm:$0xf]  ;;  %v3856_v4 = vld [vmem:[#allocation2 + $0x40] sm:$0xf0]  ;;  %v3110_v5 = vor.u32 %v3855_v0, %v3109_v16 }
 0x17c   : > { %1455 = vmatpush.bf16.msra.mxu2 %v3887_v33  ;;  %v3114_v6 = vor.u32 %v3854_v1, %v3111_v2  ;;  %v3118_v7 = vor.u32 %v3856_v4, %v3117_v3  ;;  %v3839_v8 = vld [vmem:[%s4770_s3 + $0x60] sm:$0xff]  ;;  %v3121_v19 = vld [vmem:[#allocation2 + $0x48] sm:$0xf]  ;;  %v3858_v20 = vld [vmem:[#allocation2 + $0x50] sm:$0xf0] }
 0x17d   : > { %1504 = vmatpush.bf16.msra.mxu3 %v3895_v34  ;;  %v3831_v18 = vld [vmem:[%s4770_s3 + $0x20] sm:$0xff]  ;;  %v3857_v21 = vld [vmem:[#allocation2 + $0x4c] sm:$0xf]  ;;  %v3123_v22 = vld [vmem:[#allocation2 + $0x54] sm:$0xf0]  ;;  %v3122_v23 = vor.u32 %v3858_v20, %v3121_v19 }
 0x17e   : > { %v3129_v36 = vld [vmem:[#allocation2 + $0x50] sm:$0xf]  ;;  %v3859_v39 = vld [vmem:[#allocation2 + $0x58] sm:$0xf0]  ;;  %v3126_v24 = vor.u32 %v3857_v21, %v3123_v22  ;;  %v3133_v28 = vld [vmem:[#allocation2 + $0x60] sm:$0xf] }
 0x17f   : > { %1407 = vmatpush.bf16.msra.mxu1 %v3878_v35  ;;  %v3130_v25 = vor.u32 %v3859_v39, %v3129_v36  ;;  %v3838_v26 = vld [vmem:[%s4770_s3 + $0x58] sm:$0xff]  ;;  %v3861_v29 = vld [vmem:[#allocation2 + $0x68] sm:$0xf0]  ;;  %v3860_v30 = vld [vmem:[#allocation2 + $0x64] sm:$0xf] }
 0x180   : > { %1456 = vmatpush.bf16.msra.mxu2 %v3886_v37  ;;  %v3830_v27 = vld [vmem:[%s4770_s3 + $0x18] sm:$0xff]  ;;  %v3135_v31 = vld [vmem:[#allocation2 + $0x6c] sm:$0xf0]  ;;  %v3141_v32 = vld [vmem:[#allocation2 + $0x68] sm:$0xf]  ;;  %v3134_v34 = vor.u32 %v3861_v29, %v3133_v28 }
 0x181   : > { %1505 = vmatpush.bf16.msra.mxu3 %v3894_v38  ;;  %v3862_v33 = vld [vmem:[#allocation2 + $0x70] sm:$0xf0]  ;;  %v3138_v35 = vor.u32 %v3860_v30, %v3135_v31  ;;  %v3836_v50 = vld [vmem:[%s4770_s3 + $0x48] sm:$0xff]  ;;  %v3850_v51 = vld [vmem:[%s4770_s3 + $0xb8] sm:$0xff] }
 0x182   : > { %v3142_v37 = vor.u32 %v3862_v33, %v3141_v32  ;;  %v3837_v38 = vld [vmem:[%s4770_s3 + $0x50] sm:$0xff]  ;;  %v3828_v52 = vld [vmem:[%s4770_s3 + $0x8] sm:$0xff]  ;;  %v3835_v0 = vld [vmem:[%s4770_s3 + $0x40] sm:$0xff] }
 0x183   : > { %1408 = vmatpush.bf16.msra.mxu1 %v3877_v40  ;;  %v3829_v40 = vld [vmem:[%s4770_s3 + $0x10] sm:$0xff]  ;;  %v3848_v54 = vld [vmem:[%s4770_s3 + $0xa8] sm:$0xff]  ;;  %v3846_v1 = vld [vmem:[%s4770_s3 + $0x98] sm:$0xff] }
 0x184   : > { %1457 = vmatpush.bf16.msra.mxu2 %v3885_v41  ;;  %v3145_v41 = vld [vmem:[#allocation2 + $0x78] sm:$0xf]  ;;  %v3157_v55 = vld [vmem:[#allocation2 + $0x90] sm:$0xf]  ;;  %v3827_v2 = vld [vmem:[%s4770_s3] sm:$0xff] }
 0x185   : > { %1506 = vmatpush.bf16.msra.mxu3 %v3893_v42  ;;  %v3864_v42 = vld [vmem:[#allocation2 + $0x80] sm:$0xf0]  ;;  %v3845_v3 = vld [vmem:[%s4770_s3 + $0x90] sm:$0xff]  ;;  %v3844_v4 = vld [vmem:[%s4770_s3 + $0x88] sm:$0xff] }
 0x186   : > { %v3871_v19 = vld [vmem:[#allocation2 + $0xb8] sm:$0xf0]  ;;  %v3843_v36 = vld [vmem:[%s4770_s3 + $0x80] sm:$0xff]  ;;  %v3189_v28 = vld [vmem:[#allocation2 + $0xc8] sm:$0xf] }
 0x187   : > { %1409 = vmatpush.bf16.msra.mxu1 %v3876_v43  ;;  %v3863_v43 = vld [vmem:[#allocation2 + $0x7c] sm:$0xf]  ;;  %v3874_v29 = vld [vmem:[#allocation2 + $0xd0] sm:$0xf0] }
 0x188   : > { %1458 = vmatpush.bf16.msra.mxu2 %v3884_v44  ;;  %v3147_v44 = vld [vmem:[#allocation2 + $0x84] sm:$0xf0]  ;;  %v3946_v39 = vld [vmem:[%s4770_s3 + $0x238] sm:$0xff]  ;;  %v3190_v32 = vor.u32 %v3874_v29, %v3189_v28  ;;  %v3945_v33 = vld [vmem:[%s4770_s3 + $0x230] sm:$0xff] }
 0x189   : > { %1507 = vmatpush.bf16.msra.mxu3 %v3892_v45  ;;  %v3153_v45 = vld [vmem:[#allocation2 + $0x80] sm:$0xf] }
 0x18b   : > { %1410 = vmatpush.bf16.msra.mxu1 %v3875_v46  ;;  %v3865_v46 = vld [vmem:[#allocation2 + $0x88] sm:$0xf0] }
 0x18c   : > { %1459 = vmatpush.bf16.msra.mxu2 %v3883_v47  ;;  %v3146_v47 = vor.u32 %v3864_v42, %v3145_v41  ;;  %v3154_v49 = vor.u32 %v3865_v46, %v3153_v45  ;;  %v3297_v41 = vld [vmem:[#allocation2 + $0x8] sm:$0xf]  ;;  %v3805_v42 = vld [vmem:[#allocation2 + $0x10] sm:$0xf0] }
 0x18d   : > { %1508 = vmatpush.bf16.msra.mxu3 %v3891_v48  ;;  %v3150_v48 = vor.u32 %v3863_v43, %v3147_v44  ;;  %v3298_v46 = vor.u32 %v3805_v42, %v3297_v41  ;;  %v3813_v41 = vld [vmem:[#allocation2 + $0x50] sm:$0xf0]  ;;  %v3812_v42 = vld [vmem:[#allocation2 + $0x4c] sm:$0xf] }
 0x18e   : > { %1411 = vmatmul.bf16.vlgmr.msra.gmra.mxu1 %v3098_v57  ;;  %v3866_v57 = vld [vmem:[#allocation2 + $0x94] sm:$0xf] }
 0x18f   : > { %1822 = vmatpush.bf16.msrb.mxu1 %v3834_v56  ;;  %1460 = vmatmul.bf16.vlgmr.msra.gmra.mxu2 %v3102_v58  ;;  %v3867_v56 = vld [vmem:[#allocation2 + $0x98] sm:$0xf0]  ;;  %v3159_v58 = vld [vmem:[#allocation2 + $0x9c] sm:$0xf0] }
 0x190   : > { %1871 = vmatpush.bf16.msrb.mxu2 %v3842_v53  ;;  %1509 = vmatmul.bf16.vlgmr.msra.gmra.mxu3 %v3106_v59  ;;  %v3849_v53 = vld [vmem:[%s4770_s3 + $0xb0] sm:$0xff]  ;;  %v3165_v59 = vld [vmem:[#allocation2 + $0x98] sm:$0xf] }
 0x191   : > { %1920 = vmatpush.bf16.msrb.mxu3 %v3850_v51  ;;  %v3936_v51 = vld [vmem:[%s4770_s3 + $0x1e8] sm:$0xff] }
 0x193   : > { %1823 = vmatpush.bf16.msrb.mxu1 %v3833_v61  ;;  %v3847_v61 = vld [vmem:[%s4770_s3 + $0xa0] sm:$0xff] }
 0x194   : > { %1872 = vmatpush.bf16.msrb.mxu2 %v3841_v60  ;;  %v3868_v60 = vld [vmem:[#allocation2 + $0xa0] sm:$0xf0] }
 0x195   : > { %1921 = vmatpush.bf16.msrb.mxu3 %v3849_v53  ;;  %v3166_v16 = vor.u32 %v3868_v60, %v3165_v59  ;;  %v3808_v59 = vld [vmem:[#allocation2 + $0x28] sm:$0xf0] }
 0x197   : > { %1824 = vmatpush.bf16.msrb.mxu1 %v3832_v63  ;;  %v3162_v63 = vor.u32 %v3866_v57, %v3159_v58  ;;  %v3303_v57 = vld [vmem:[#allocation2 + $0x24] sm:$0xf0]  ;;  %v3309_v58 = vld [vmem:[#allocation2 + $0x20] sm:$0xf] }
 0x198   : > { %1873 = vmatpush.bf16.msrb.mxu2 %v3840_v62  ;;  %v3158_v62 = vor.u32 %v3867_v56, %v3157_v55  ;;  %v3807_v55 = vld [vmem:[#allocation2 + $0x20] sm:$0xf0]  ;;  %v3806_v56 = vld [vmem:[#allocation2 + $0x1c] sm:$0xf] }
 0x199   : > { %1922 = vmatpush.bf16.msrb.mxu3 %v3848_v54  ;;  %v3301_v54 = vld [vmem:[#allocation2 + $0x18] sm:$0xf] }
 0x19b   : > { %1825 = vmatpush.bf16.msrb.mxu1 %v3831_v18  ;;  %v3177_v18 = vld [vmem:[#allocation2 + $0xb0] sm:$0xf] }
 0x19c   : > { %1874 = vmatpush.bf16.msrb.mxu2 %v3839_v8  ;;  %v3171_v8 = vld [vmem:[#allocation2 + $0xb4] sm:$0xf0]  ;;  %v3178_v22 = vor.u32 %v3871_v19, %v3177_v18  ;;  %v3313_v19 = vld [vmem:[#allocation2 + $0x30] sm:$0xf] }
 0x19d   : > { %1923 = vmatpush.bf16.msrb.mxu3 %v3847_v61 }
 0x19e   : > { %1416 = vmatmul.bf16.gmra.mxu1 %v3110_v5  ;;  %v3169_v5 = vld [vmem:[#allocation2 + $0xa8] sm:$0xf] }
 0x19f   : > { %1465 = vmatmul.bf16.gmra.mxu2 %v3114_v6  ;;  %1826 = vmatpush.bf16.msrb.mxu1 %v3830_v27  ;;  %v3870_v6 = vld [vmem:[#allocation2 + $0xb0] sm:$0xf0]  ;;  %v3183_v27 = vld [vmem:[#allocation2 + $0xcc] sm:$0xf0] }
 0x1a0   : > { %1514 = vmatmul.bf16.gmra.mxu3 %v3118_v7  ;;  %1875 = vmatpush.bf16.msrb.mxu2 %v3838_v26  ;;  %v3869_v7 = vld [vmem:[#allocation2 + $0xac] sm:$0xf]  ;;  %v3170_v20 = vor.u32 %v3870_v6, %v3169_v5  ;;  %v3872_v26 = vld [vmem:[#allocation2 + $0xc4] sm:$0xf] }
 0x1a1   : > { %1924 = vmatpush.bf16.msrb.mxu3 %v3846_v1  ;;  %v3174_v21 = vor.u32 %v3869_v7, %v3171_v8  ;;  %v3186_v31 = vor.u32 %v3872_v26, %v3183_v27  ;;  %v3310_v1 = vor.u32 %v3808_v59, %v3309_v58  ;;  %v3935_v7 = vld [vmem:[%s4770_s3 + $0x1e0] sm:$0xff]  ;;  %v3933_v59 = vld [vmem:[%s4770_s3 + $0x1d0] sm:$0xff] }
 0x1a3   : > { %1827 = vmatpush.bf16.msrb.mxu1 %v3829_v40  ;;  %v3291_v40 = vld [vmem:[#allocation2 + $0xc] sm:$0xf0] }
 0x1a4   : > { %1876 = vmatpush.bf16.msrb.mxu2 %v3837_v38  ;;  %v3803_v38 = vld [vmem:[#allocation2 + $0x4] sm:$0xf] }
 0x1a5   : > { %1925 = vmatpush.bf16.msrb.mxu3 %v3845_v3  ;;  %v3294_v44 = vor.u32 %v3803_v38, %v3291_v40  ;;  %v3943_v3 = vld [vmem:[%s4770_s3 + $0x220] sm:$0xff]  ;;  %v3325_v40 = vld [vmem:[#allocation2 + $0x48] sm:$0xf] }
 0x1a7   : > { %1828 = vmatpush.bf16.msrb.mxu1 %v3828_v52 }
 0x1a8   : > { %1877 = vmatpush.bf16.msrb.mxu2 %v3836_v50 }
 0x1a9   : > { %1926 = vmatpush.bf16.msrb.mxu3 %v3844_v4 }
 0x1ab   : > { %1829 = vmatpush.bf16.msrb.mxu1 %v3827_v2 }
 0x1ac   : > { %1878 = vmatpush.bf16.msrb.mxu2 %v3835_v0 }
 0x1ad   : > { %1927 = vmatpush.bf16.msrb.mxu3 %v3843_v36  ;;  %v3321_v36 = vld [vmem:[#allocation2 + $0x38] sm:$0xf] }
 0x1ae   : > { %1421 = vmatmul.bf16.gmra.mxu1 %v3122_v23  ;;  %v3938_v23 = vld [vmem:[%s4770_s3 + $0x1f8] sm:$0xff] }
 0x1af   : > { %1470 = vmatmul.bf16.gmra.mxu2 %v3126_v24  ;;  %2372 = vmatpush.bf16.msra.mxu1 %v3938_v23  ;;  %v3181_v24 = vld [vmem:[#allocation2 + $0xc0] sm:$0xf] }
 0x1b0   : > { %1519 = vmatmul.bf16.gmra.mxu3 %v3130_v25  ;;  %2421 = vmatpush.bf16.msra.mxu2 %v3946_v39  ;;  %v3873_v25 = vld [vmem:[#allocation2 + $0xc8] sm:$0xf0]  ;;  %v3811_v39 = vld [vmem:[#allocation2 + $0x40] sm:$0xf0] }
 0x1b1   : > { %v3182_v30 = vor.u32 %v3873_v25, %v3181_v24  ;;  %v3322_v29 = vor.u32 %v3811_v39, %v3321_v36  ;;  %v3929_v36 = vld [vmem:[%s4770_s3 + $0x1b0] sm:$0xff]  ;;  %v3940_v39 = vld [vmem:[%s4770_s3 + $0x208] sm:$0xff] }
 0x1b4   : > { %2422 = vmatpush.bf16.msra.mxu2 %v3945_v33 }
 0x1be   : > { %1426 = vmatmul.bf16.gmra.mxu1 %v3134_v34  ;;  %v3937_v34 = vld [vmem:[%s4770_s3 + $0x1f0] sm:$0xff] }
 0x1bf   : > { %1475 = vmatmul.bf16.gmra.mxu2 %v3138_v35  ;;  %2373 = vmatpush.bf16.msra.mxu1 %v3937_v34  ;;  %v3289_v35 = vld [vmem:[#allocation2] sm:$0xf] }
 0x1c0   : > { %1524 = vmatmul.bf16.gmra.mxu3 %v3142_v37  ;;  %v3804_v37 = vld [vmem:[#allocation2 + $0x8] sm:$0xf0] }
 0x1c1   : > { %v3290_v43 = vor.u32 %v3804_v37, %v3289_v35  ;;  %v3934_v35 = vld [vmem:[%s4770_s3 + $0x1d8] sm:$0xff] }
 0x1c3   : > { %2374 = vmatpush.bf16.msra.mxu1 %v3936_v51 }
 0x1c7   : > { %2375 = vmatpush.bf16.msra.mxu1 %v3935_v7 }
 0x1cb   : > { %2376 = vmatpush.bf16.msra.mxu1 %v3934_v35  ;;  %v3351_v35 = vld [vmem:[#allocation2 + $0x84] sm:$0xf0] }
 0x1ce   : > { %1431 = vmatmul.bf16.gmra.mxu1 %v3146_v47  ;;  %v3944_v47 = vld [vmem:[%s4770_s3 + $0x228] sm:$0xff] }
 0x1cf   : > { %1480 = vmatmul.bf16.gmra.mxu2 %v3150_v48  ;;  %2377 = vmatpush.bf16.msra.mxu1 %v3933_v59 }
 0x1d0   : > { %1529 = vmatmul.bf16.gmra.mxu3 %v3154_v49  ;;  %2423 = vmatpush.bf16.msra.mxu2 %v3944_v47 }
 0x1d4   : > { %2424 = vmatpush.bf16.msra.mxu2 %v3943_v3  ;;  %v3817_v3 = vld [vmem:[#allocation2 + $0x70] sm:$0xf0] }
 0x1de   : > { %1436 = vmatmul.bf16.gmra.mxu1 %v3158_v62 }
 0x1df   : > { %1485 = vmatmul.bf16.gmra.mxu2 %v3162_v63  ;;  %v3302_v63 = vor.u32 %v3807_v55, %v3301_v54  ;;  %v3941_v55 = vld [vmem:[%s4770_s3 + $0x210] sm:$0xff] }
 0x1e0   : > { %1534 = vmatmul.bf16.gmra.mxu3 %v3166_v16  ;;  %v3306_v16 = vor.u32 %v3806_v56, %v3303_v57 }
 0x1ee   : > { %1441 = vmatmul.bf16.gmra.mxu1 %v3170_v20  ;;  %v3810_v20 = vld [vmem:[#allocation2 + $0x38] sm:$0xf0] }
 0x1ef   : > { %1490 = vmatmul.bf16.gmra.mxu2 %v3174_v21  ;;  %v3809_v21 = vld [vmem:[#allocation2 + $0x34] sm:$0xf]  ;;  %v3314_v26 = vor.u32 %v3810_v20, %v3313_v19 }
 0x1f0   : > { %1539 = vmatmul.bf16.gmra.mxu3 %v3178_v22  ;;  %v3315_v22 = vld [vmem:[#allocation2 + $0x3c] sm:$0xf0] }
 0x1f1   : > { %v3318_v27 = vor.u32 %v3809_v21, %v3315_v22 }
 0x1fe   : > { %1446 = vmatmul.bf16.gmra.mxu1 %v3182_v30 }
 0x1ff   : > { %1495 = vmatmul.bf16.gmra.mxu2 %v3186_v31  ;;  %v3942_v31 = vld [vmem:[%s4770_s3 + $0x218] sm:$0xff] }
 0x200   : > { %1544 = vmatmul.bf16.gmra.mxu3 %v3190_v32  ;;  %2425 = vmatpush.bf16.msra.mxu2 %v3942_v31  ;;  %v3927_v31 = vld [vmem:[%s4770_s3 + $0x1a0] sm:$0xff] }
 0x204   : > { %2426 = vmatpush.bf16.msra.mxu2 %v3941_v55 }
 0x208   : > { %2427 = vmatpush.bf16.msra.mxu2 %v3940_v39 }
 0x20b   : > { %v1412_v45 = vpop.f32.mrf.mxu1 }
 0x20e   : > { %1830 = vmatmul.bf16.vlgmr.msrb.gmra.mxu1 %v3290_v43  ;;  %v3327_v43 = vld [vmem:[#allocation2 + $0x54] sm:$0xf0] }
 0x20f   : > { %1879 = vmatmul.bf16.vlgmr.msrb.gmra.mxu2 %v3294_v44  ;;  %v3333_v44 = vld [vmem:[#allocation2 + $0x50] sm:$0xf] }
 0x210   : > { %1928 = vmatmul.bf16.vlgmr.msrb.gmra.mxu3 %v3298_v46 }
 0x212   : > { %v1461_v48 = vpop.f32.mrf.mxu2 }
 0x213   : > { %v1462_v49 = vadd.f32 %v1461_v48, %v1412_v45  ;;  %v1510_v50 = vpop.f32.mrf.mxu3  ;;  %v1414_v52 = vpop.f32.mrf.mxu1  ;;  %v3814_v45 = vld [vmem:[#allocation2 + $0x58] sm:$0xf0] }
 0x215   : > { %v4487_v53 = vadd.f32 %v1510_v50, %v1462_v49  ;;  %v3326_v49 = vor.u32 %v3813_v41, %v3325_v40  ;;  %v3330_v50 = vor.u32 %v3812_v42, %v3327_v43  ;;  %v3820_v40 = vld [vmem:[#allocation2 + $0x88] sm:$0xf0]  ;;  %v3926_v42 = vld [vmem:[%s4770_s3 + $0x198] sm:$0xff] }
 0x21a   : > { %v1463_v60 = vpop.f32.mrf.mxu2 }
 0x21b   : > { %v1464_v61 = vadd.f32 %v1463_v60, %v1414_v52  ;;  %v1512_v62 = vpop.f32.mrf.mxu3  ;;  %v1417_v0 = vpop.f32.mrf.mxu1  ;;  %v3334_v52 = vor.u32 %v3814_v45, %v3333_v44 }
 0x21d   : > { %v4489_v2 = vadd.f32 %v1512_v62, %v1464_v61  ;;  %v3337_v62 = vld [vmem:[#allocation2 + $0x60] sm:$0xf] }
 0x21e   : > { %1835 = vmatmul.bf16.gmra.mxu1 %v3302_v63  ;;  %v3816_v63 = vld [vmem:[#allocation2 + $0x68] sm:$0xf0] }
 0x21f   : > { %1884 = vmatmul.bf16.gmra.mxu2 %v3306_v16  ;;  %v3815_v16 = vld [vmem:[#allocation2 + $0x64] sm:$0xf] }
 0x220   : > { %1933 = vmatmul.bf16.gmra.mxu3 %v3310_v1  ;;  %v3345_v1 = vld [vmem:[#allocation2 + $0x68] sm:$0xf] }
 0x221   : > { %v3346_v21 = vor.u32 %v3817_v3, %v3345_v1  ;;  %v3529_v1 = vld [vmem:[#allocation2 + $0x30] sm:$0xf]  ;;  %v3900_v3 = vld [vmem:[#allocation2 + $0x38] sm:$0xf0] }
 0x222   : > { %v1466_v4 = vpop.f32.mrf.mxu2 }
 0x223   : > { %v1467_v5 = vadd.f32 %v1466_v4, %v1417_v0  ;;  %v1515_v6 = vpop.f32.mrf.mxu3  ;;  %v1419_v8 = vpop.f32.mrf.mxu1  ;;  %v3339_v0 = vld [vmem:[#allocation2 + $0x6c] sm:$0xf0] }
 0x224   : > { %v3342_v19 = vor.u32 %v3815_v16, %v3339_v0  ;;  %v3821_v16 = vld [vmem:[#allocation2 + $0x94] sm:$0xf]  ;;  %v3363_v0 = vld [vmem:[#allocation2 + $0x9c] sm:$0xf0] }
 0x225   : > { %v4497_v18 = vadd.f32 %v1515_v6, %v1467_v5  ;;  %v3930_v5 = vld [vmem:[%s4770_s3 + $0x1b8] sm:$0xff] }
 0x226   : > { %2323 = vmatpush.bf16.msrb.mxu0 %v3930_v5  ;;  %v3823_v5 = vld [vmem:[#allocation2 + $0xa0] sm:$0xf0] }
 0x22a   : > { %v1468_v23 = vpop.f32.mrf.mxu2  ;;  %2324 = vmatpush.bf16.msrb.mxu0 %v3929_v36 }
 0x22b   : > { %v1469_v24 = vadd.f32 %v1468_v23, %v1419_v8  ;;  %v1517_v25 = vpop.f32.mrf.mxu3  ;;  %v1422_v28 = vpop.f32.mrf.mxu1  ;;  %v3338_v8 = vor.u32 %v3816_v63, %v3337_v62  ;;  %v3361_v62 = vld [vmem:[#allocation2 + $0x90] sm:$0xf]  ;;  %v3822_v63 = vld [vmem:[#allocation2 + $0x98] sm:$0xf0] }
 0x22d   : > { %v4499_v30 = vadd.f32 %v1517_v25, %v1469_v24  ;;  %v3928_v24 = vld [vmem:[%s4770_s3 + $0x1a8] sm:$0xff] }
 0x22e   : > { %1840 = vmatmul.bf16.gmra.mxu1 %v3314_v26  ;;  %2325 = vmatpush.bf16.msrb.mxu0 %v3928_v24 }
 0x22f   : > { %1889 = vmatmul.bf16.gmra.mxu2 %v3318_v27  ;;  %v3932_v27 = vld [vmem:[%s4770_s3 + $0x1c8] sm:$0xff] }
 0x230   : > { %1938 = vmatmul.bf16.gmra.mxu3 %v3322_v29  ;;  %2378 = vmatpush.bf16.msra.mxu1 %v3932_v27 }
 0x232   : > { %v1471_v32 = vpop.f32.mrf.mxu2  ;;  %2326 = vmatpush.bf16.msrb.mxu0 %v3927_v31  ;;  %v3825_v31 = vld [vmem:[#allocation2 + $0xb0] sm:$0xf0] }
 0x233   : > { %v1472_v33 = vadd.f32 %v1471_v32, %v1422_v28  ;;  %v1520_v34 = vpop.f32.mrf.mxu3  ;;  %v1424_v37 = vpop.f32.mrf.mxu1  ;;  %v3349_v32 = vld [vmem:[#allocation2 + $0x78] sm:$0xf] }
 0x235   : > { %v4507_v38 = vadd.f32 %v1520_v34, %v1472_v33  ;;  %v3819_v33 = vld [vmem:[#allocation2 + $0x80] sm:$0xf0]  ;;  %v3818_v34 = vld [vmem:[#allocation2 + $0x7c] sm:$0xf] }
 0x236   : > { %v3350_v45 = vor.u32 %v3819_v33, %v3349_v32  ;;  %2327 = vmatpush.bf16.msrb.mxu0 %v3926_v42  ;;  %v3824_v32 = vld [vmem:[#allocation2 + $0xac] sm:$0xf]  ;;  %v3375_v33 = vld [vmem:[#allocation2 + $0xb4] sm:$0xf0] }
 0x23a   : > { %v1473_v46 = vpop.f32.mrf.mxu2 }
 0x23b   : > { %v1474_v47 = vadd.f32 %v1473_v46, %v1424_v37  ;;  %v1522_v48 = vpop.f32.mrf.mxu3  ;;  %v1427_v51 = vpop.f32.mrf.mxu1  ;;  %v3357_v37 = vld [vmem:[#allocation2 + $0x80] sm:$0xf]  ;;  %v3354_v46 = vor.u32 %v3818_v34, %v3351_v35  ;;  %v3541_v34 = vld [vmem:[#allocation2 + $0x48] sm:$0xf]  ;;  %v3903_v35 = vld [vmem:[#allocation2 + $0x50] sm:$0xf0] }
 0x23d   : > { %v4509_v54 = vadd.f32 %v1522_v48, %v1474_v47  ;;  %v3358_v48 = vor.u32 %v3820_v40, %v3357_v37  ;;  %v3381_v37 = vld [vmem:[#allocation2 + $0xb0] sm:$0xf]  ;;  %v3826_v40 = vld [vmem:[#allocation2 + $0xb8] sm:$0xf0] }
 0x23e   : > { %1845 = vmatmul.bf16.gmra.mxu1 %v3326_v49  ;;  %v3925_v49 = vld [vmem:[%s4770_s3 + $0x190] sm:$0xff] }
 0x23f   : > { %1894 = vmatmul.bf16.gmra.mxu2 %v3330_v50  ;;  %v3939_v50 = vld [vmem:[%s4770_s3 + $0x200] sm:$0xff]  ;;  %2328 = vmatpush.bf16.msrb.mxu0 %v3925_v49 }
 0x240   : > { %1943 = vmatmul.bf16.gmra.mxu3 %v3334_v52  ;;  %2428 = vmatpush.bf16.msra.mxu2 %v3939_v50  ;;  %v3924_v52 = vld [vmem:[%s4770_s3 + $0x188] sm:$0xff]  ;;  %v3382_v50 = vor.u32 %v3826_v40, %v3381_v37 }
 0x242   : > { %v1476_v56 = vpop.f32.mrf.mxu2 }
 0x243   : > { %v1477_v57 = vadd.f32 %v1476_v56, %v1427_v51  ;;  %v1525_v58 = vpop.f32.mrf.mxu3  ;;  %v1429_v60 = vpop.f32.mrf.mxu1  ;;  %2329 = vmatpush.bf16.msrb.mxu0 %v3924_v52 }
 0x245   : > { %v4517_v61 = vadd.f32 %v1525_v58, %v1477_v57  ;;  %v3931_v57 = vld [vmem:[%s4770_s3 + $0x1c0] sm:$0xff] }
 0x246   : > { %2379 = vmatpush.bf16.msra.mxu1 %v3931_v57 }
 0x24a   : > { %v1478_v4 = vpop.f32.mrf.mxu2 }
 0x24b   : > { %v1479_v6 = vadd.f32 %v1478_v4, %v1429_v60  ;;  %v1527_v7 = vpop.f32.mrf.mxu3  ;;  %v1432_v20 = vpop.f32.mrf.mxu1  ;;  %v3923_v60 = vld [vmem:[%s4770_s3 + $0x180] sm:$0xff]  ;;  %v3369_v4 = vld [vmem:[#allocation2 + $0x98] sm:$0xf] }
 0x24c   : > { %2330 = vmatpush.bf16.msrb.mxu0 %v3923_v60  ;;  %v3370_v39 = vor.u32 %v3823_v5, %v3369_v4  ;;  %v3899_v60 = vld [vmem:[#allocation2 + $0x34] sm:$0xf] }
 0x24d   : > { %v4522_v22 = vadd.f32 %v1527_v7, %v1479_v6  ;;  %v3530_v6 = vor.u32 %v3900_v3, %v3529_v1  ;;  %v3906_v1 = vld [vmem:[#allocation2 + $0x68] sm:$0xf0] }
 0x24e   : > { %1850 = vmatmul.bf16.gmra.mxu1 %v3338_v8 }
 0x24f   : > { %1899 = vmatmul.bf16.gmra.mxu2 %v3342_v19  ;;  %2331 = vmatmul.bf16.vlgmr.msrb.gmra.mxu0 %v3530_v6 }
 0x250   : > { %1948 = vmatmul.bf16.gmra.mxu3 %v3346_v21  ;;  %v3366_v21 = vor.u32 %v3821_v16, %v3363_v0  ;;  %v3901_v16 = vld [vmem:[#allocation2 + $0x40] sm:$0xf0]  ;;  %v3553_v0 = vld [vmem:[#allocation2 + $0x60] sm:$0xf] }
 0x251   : > { %v3554_v3 = vor.u32 %v3906_v1, %v3553_v0 }
 0x252   : > { %v1481_v23 = vpop.f32.mrf.mxu2 }
 0x253   : > { %v1482_v25 = vadd.f32 %v1481_v23, %v1432_v20  ;;  %v1530_v26 = vpop.f32.mrf.mxu3  ;;  %v1434_v28 = vpop.f32.mrf.mxu1  ;;  %v3362_v20 = vor.u32 %v3822_v63, %v3361_v62  ;;  %v3531_v62 = vld [vmem:[#allocation2 + $0x3c] sm:$0xf0]  ;;  %v3537_v63 = vld [vmem:[#allocation2 + $0x38] sm:$0xf] }
 0x254   : > { %v3534_v6 = vor.u32 %v3899_v60, %v3531_v62  ;;  %v3577_v60 = vld [vmem:[#allocation2 + $0x90] sm:$0xf]  ;;  %v3912_v62 = vld [vmem:[#allocation2 + $0x98] sm:$0xf0] }
 0x255   : > { %v4536_v29 = vadd.f32 %v1530_v26, %v1482_v25 }
 0x25a   : > { %v1483_v41 = vpop.f32.mrf.mxu2 }
 0x25b   : > { %v4544_v43 = vadd.f32 %v1483_v41, %v1434_v28  ;;  %v4546_v44 = vpop.f32.mrf.mxu3  ;;  %v1437_v47 = vpop.f32.mrf.mxu1  ;;  %v3373_v28 = vld [vmem:[#allocation2 + $0xa8] sm:$0xf]  ;;  %v3542_v41 = vor.u32 %v3903_v35, %v3541_v34  ;;  %v3909_v34 = vld [vmem:[#allocation2 + $0x80] sm:$0xf0] }
 0x25e   : > { %1855 = vmatmul.bf16.gmra.mxu1 %v3350_v45 }
 0x25f   : > { %1904 = vmatmul.bf16.gmra.mxu2 %v3354_v46  ;;  %2336 = vmatmul.bf16.gmra.mxu0 %v3542_v41 }
 0x260   : > { %1953 = vmatmul.bf16.gmra.mxu3 %v3358_v48  ;;  %v3378_v48 = vor.u32 %v3824_v32, %v3375_v33  ;;  %v3904_v32 = vld [vmem:[#allocation2 + $0x58] sm:$0xf0]  ;;  %v3565_v33 = vld [vmem:[#allocation2 + $0x78] sm:$0xf] }
 0x262   : > { %v1486_v51 = vpop.f32.mrf.mxu2 }
 0x263   : > { %v1487_v55 = vadd.f32 %v1486_v51, %v1437_v47  ;;  %v1535_v56 = vpop.f32.mrf.mxu3  ;;  %v1439_v58 = vpop.f32.mrf.mxu1  ;;  %v3374_v47 = vor.u32 %v3825_v31, %v3373_v28  ;;  %v3543_v28 = vld [vmem:[#allocation2 + $0x54] sm:$0xf0]  ;;  %v3549_v31 = vld [vmem:[#allocation2 + $0x50] sm:$0xf] }
 0x264   : > { %v3550_v41 = vor.u32 %v3904_v32, %v3549_v31  ;;  %v3915_v31 = vld [vmem:[#allocation2 + $0xb0] sm:$0xf0] }
 0x265   : > { %v4560_v59 = vadd.f32 %v1535_v56, %v1487_v55 }
 0x26a   : > { %v1488_v7 = vpop.f32.mrf.mxu2 }
 0x26b   : > { %v4565_v8 = vadd.f32 %v1488_v7, %v1439_v58  ;;  %v4567_v19 = vpop.f32.mrf.mxu3  ;;  %v1442_v36 = vpop.f32.mrf.mxu1  ;;  %v3954_v58 = vld [vmem:[%s4772_s5 + $0x38] sm:$0xff]  ;;  %v3538_v7 = vor.u32 %v3901_v16, %v3537_v63  ;;  %v3578_v63 = vor.u32 %v3912_v62, %v3577_v60 }
 0x26c   : > { %2718 = vmatpush.bf16.msra.mxu3 %v3954_v58  ;;  %v3907_v58 = vld [vmem:[#allocation2 + $0x70] sm:$0xf0] }
 0x26e   : > { %1860 = vmatmul.bf16.gmra.mxu1 %v3362_v20 }
 0x26f   : > { %1909 = vmatmul.bf16.gmra.mxu2 %v3366_v21  ;;  %2341 = vmatmul.bf16.gmra.mxu0 %v3554_v3 }
 0x270   : > { %1958 = vmatmul.bf16.gmra.mxu3 %v3370_v39 }
 0x272   : > { %v1491_v23 = vpop.f32.mrf.mxu2 }
 0x273   : > { %v1492_v24 = vadd.f32 %v1491_v23, %v1442_v36  ;;  %v1540_v25 = vpop.f32.mrf.mxu3  ;;  %v1444_v26 = vpop.f32.mrf.mxu1 }
 0x275   : > { %v4569_v27 = vadd.f32 %v1540_v25, %v1492_v24  ;;  %v3953_v25 = vld [vmem:[%s4772_s5 + $0x30] sm:$0xff] }
 0x276   : > { %2719 = vmatpush.bf16.msra.mxu3 %v3953_v25  ;;  %v3573_v25 = vld [vmem:[#allocation2 + $0x80] sm:$0xf] }
 0x27a   : > { %v1493_v42 = vpop.f32.mrf.mxu2 }
 0x27b   : > { %v4571_v45 = vadd.f32 %v1493_v42, %v1444_v26  ;;  %v4573_v46 = vpop.f32.mrf.mxu3  ;;  %v1447_v49 = vpop.f32.mrf.mxu1  ;;  %v3902_v26 = vld [vmem:[#allocation2 + $0x4c] sm:$0xf] }
 0x27c   : > { %v3546_v40 = vor.u32 %v3902_v26, %v3543_v28  ;;  %v3910_v26 = vld [vmem:[#allocation2 + $0x88] sm:$0xf0]  ;;  %v3589_v28 = vld [vmem:[#allocation2 + $0xa8] sm:$0xf] }
 0x27d   : > { %v3590_v32 = vor.u32 %v3915_v31, %v3589_v28 }
 0x27e   : > { %1865 = vmatmul.bf16.gmra.mxu1 %v3374_v47  ;;  %v3962_v47 = vld [vmem:[%s4772_s5 + $0x78] sm:$0xff] }
 0x27f   : > { %1914 = vmatmul.bf16.gmra.mxu2 %v3378_v48  ;;  %2767 = vmatpush.bf16.msra.mxu0 %v3962_v47 }
 0x280   : > { %1963 = vmatmul.bf16.gmra.mxu3 %v3382_v50  ;;  %4010 = vmatpush.bf16.msrb.mxu1 %v3962_v47 }
 0x282   : > { %v1496_v51 = vpop.f32.mrf.mxu2 }
 0x283   : > { %v1497_v52 = vadd.f32 %v1496_v51, %v1447_v49  ;;  %v1545_v55 = vpop.f32.mrf.mxu3  ;;  %v1449_v56 = vpop.f32.mrf.mxu1 }
 0x285   : > { %v4575_v57 = vadd.f32 %v1545_v55, %v1497_v52  ;;  %v3952_v52 = vld [vmem:[%s4772_s5 + $0x28] sm:$0xff]  ;;  %v3905_v55 = vld [vmem:[#allocation2 + $0x64] sm:$0xf] }
 0x286   : > { %2720 = vmatpush.bf16.msra.mxu3 %v3952_v52  ;;  %v3585_v52 = vld [vmem:[#allocation2 + $0x98] sm:$0xf] }
 0x28a   : > { %v1498_v4 = vpop.f32.mrf.mxu2 }
 0x28b   : > { %v4580_v5 = vadd.f32 %v1498_v4, %v1449_v56  ;;  %v1831_v20 = vpop.f32.mrf.mxu1  ;;  %v3561_v56 = vld [vmem:[#allocation2 + $0x68] sm:$0xf] }
 0x28c   : > { %v1832_v21 = vadd.f32 %v1831_v20, %v4487_v53  ;;  %v3566_v53 = vor.u32 %v3909_v34, %v3565_v33  ;;  %v3562_v3 = vor.u32 %v3907_v58, %v3561_v56  ;;  %v3918_v56 = vld [vmem:[#allocation2 + $0xc8] sm:$0xf0] }
 0x28e   : > { %2380 = vmatmul.bf16.vlgmr.msra.gmra.mxu1 %v3534_v6  ;;  %2346 = vmatmul.bf16.gmra.mxu0 %v3566_v53  ;;  %v3961_v6 = vld [vmem:[%s4772_s5 + $0x70] sm:$0xff] }
 0x28f   : > { %2429 = vmatmul.bf16.vlgmr.msra.gmra.mxu2 %v3538_v7  ;;  %2768 = vmatpush.bf16.msra.mxu0 %v3961_v6 }
 0x290   : > { %4011 = vmatpush.bf16.msrb.mxu1 %v3961_v6 }
 0x292   : > { %v1880_v36 = vpop.f32.mrf.mxu2 }
 0x293   : > { %v4583_v39 = vadd.f32 %v1880_v36, %v1832_v21  ;;  %v1833_v23 = vpop.f32.mrf.mxu1 }
 0x294   : > { %v1834_v24 = vadd.f32 %v1833_v23, %v4489_v2  ;;  %v3951_v23 = vld [vmem:[%s4772_s5 + $0x20] sm:$0xff] }
 0x295   : > { %2721 = vmatpush.bf16.msra.mxu3 %v3951_v23  ;;  %v3591_v23 = vld [vmem:[#allocation2 + $0xb4] sm:$0xf0] }
 0x29a   : > { %v1882_v35 = vpop.f32.mrf.mxu2 }
 0x29b   : > { %v4589_v37 = vadd.f32 %v1882_v35, %v1834_v24  ;;  %v1836_v42 = vpop.f32.mrf.mxu1  ;;  %v3908_v24 = vld [vmem:[#allocation2 + $0x7c] sm:$0xf]  ;;  %v3574_v35 = vor.u32 %v3910_v26, %v3573_v25  ;;  %v3613_v25 = vld [vmem:[#allocation2 + $0xd8] sm:$0xf]  ;;  %v3921_v26 = vld [vmem:[#allocation2 + $0xe0] sm:$0xf0] }
 0x29c   : > { %v1837_v2 = vadd.f32 %v1836_v42, %v4497_v18  ;;  %v3555_v18 = vld [vmem:[#allocation2 + $0x6c] sm:$0xf0]  ;;  %v3614_v28 = vor.u32 %v3921_v26, %v3613_v25 }
 0x29d   : > { %v3558_v1 = vor.u32 %v3905_v55, %v3555_v18  ;;  %v3913_v55 = vld [vmem:[#allocation2 + $0xa0] sm:$0xf0]  ;;  %v3601_v18 = vld [vmem:[#allocation2 + $0xc0] sm:$0xf] }
 0x29e   : > { %2385 = vmatmul.bf16.gmra.mxu1 %v3546_v40  ;;  %2351 = vmatmul.bf16.gmra.mxu0 %v3578_v63  ;;  %v3602_v58 = vor.u32 %v3918_v56, %v3601_v18 }
 0x29f   : > { %2434 = vmatmul.bf16.gmra.mxu2 %v3550_v41  ;;  %v3960_v41 = vld [vmem:[%s4772_s5 + $0x68] sm:$0xff] }
 0x2a0   : > { %2769 = vmatpush.bf16.msra.mxu0 %v3960_v41  ;;  %4012 = vmatpush.bf16.msrb.mxu1 %v3960_v41 }
 0x2a2   : > { %v1885_v48 = vpop.f32.mrf.mxu2 }
 0x2a3   : > { %v4595_v49 = vadd.f32 %v1885_v48, %v1837_v2  ;;  %v1838_v50 = vpop.f32.mrf.mxu1 }
 0x2a4   : > { %v1839_v51 = vadd.f32 %v1838_v50, %v4499_v30  ;;  %v3950_v50 = vld [vmem:[%s4772_s5 + $0x18] sm:$0xff] }
 0x2a5   : > { %2722 = vmatpush.bf16.msra.mxu3 %v3950_v50  ;;  %v3917_v50 = vld [vmem:[#allocation2 + $0xc4] sm:$0xf] }
 0x2aa   : > { %v1887_v16 = vpop.f32.mrf.mxu2 }
 0x2ab   : > { %v4601_v0 = vadd.f32 %v1887_v16, %v1839_v51  ;;  %v1841_v4 = vpop.f32.mrf.mxu1  ;;  %v3911_v51 = vld [vmem:[#allocation2 + $0x94] sm:$0xf]  ;;  %v3586_v16 = vor.u32 %v3913_v55, %v3585_v52 }
 0x2ac   : > { %v1842_v30 = vadd.f32 %v1841_v4, %v4507_v38  ;;  %v3567_v38 = vld [vmem:[#allocation2 + $0x84] sm:$0xf0]  ;;  %v3919_v52 = vld [vmem:[#allocation2 + $0xd0] sm:$0xf0] }
 0x2ad   : > { %v3570_v53 = vor.u32 %v3908_v24, %v3567_v38  ;;  %v3597_v24 = vld [vmem:[#allocation2 + $0xb0] sm:$0xf]  ;;  %v3916_v38 = vld [vmem:[#allocation2 + $0xb8] sm:$0xf0] }
 0x2ae   : > { %2390 = vmatmul.bf16.gmra.mxu1 %v3558_v1  ;;  %2356 = vmatmul.bf16.gmra.mxu0 %v3590_v32 }
 0x2af   : > { %2439 = vmatmul.bf16.gmra.mxu2 %v3562_v3  ;;  %v3959_v3 = vld [vmem:[%s4772_s5 + $0x60] sm:$0xff] }
 0x2b0   : > { %2770 = vmatpush.bf16.msra.mxu0 %v3959_v3  ;;  %4013 = vmatpush.bf16.msrb.mxu1 %v3959_v3 }
 0x2b2   : > { %v1890_v7 = vpop.f32.mrf.mxu2 }
 0x2b3   : > { %v4607_v20 = vadd.f32 %v1890_v7, %v1842_v30  ;;  %v1843_v21 = vpop.f32.mrf.mxu1  ;;  %v1533_v30 = vadd.f32 %v4546_v44, %v4544_v43  ;;  %v3598_v44 = vor.u32 %v3916_v38, %v3597_v24 }
 0x2b4   : > { %v1844_v36 = vadd.f32 %v1843_v21, %v4509_v54 }
 0x2ba   : > { %v1892_v33 = vpop.f32.mrf.mxu2 }
 0x2bb   : > { %v4613_v34 = vadd.f32 %v1892_v33, %v1844_v36  ;;  %v1846_v40 = vpop.f32.mrf.mxu1  ;;  %v3914_v36 = vld [vmem:[#allocation2 + $0xac] sm:$0xf] }
 0x2bc   : > { %v1847_v54 = vadd.f32 %v1846_v40, %v4517_v61  ;;  %v3579_v61 = vld [vmem:[#allocation2 + $0x9c] sm:$0xf0]  ;;  %v3594_v43 = vor.u32 %v3914_v36, %v3591_v23 }
 0x2bd   : > { %v3582_v63 = vor.u32 %v3911_v51, %v3579_v61  ;;  %v3603_v51 = vld [vmem:[#allocation2 + $0xcc] sm:$0xf0]  ;;  %v3609_v61 = vld [vmem:[#allocation2 + $0xc8] sm:$0xf] }
 0x2be   : > { %2395 = vmatmul.bf16.gmra.mxu1 %v3570_v53  ;;  %2361 = vmatmul.bf16.gmra.mxu0 %v3602_v58  ;;  %v3606_v56 = vor.u32 %v3917_v50, %v3603_v51  ;;  %v3610_v58 = vor.u32 %v3919_v52, %v3609_v61 }
 0x2bf   : > { %2444 = vmatmul.bf16.gmra.mxu2 %v3574_v35  ;;  %v3958_v35 = vld [vmem:[%s4772_s5 + $0x58] sm:$0xff] }
 0x2c0   : > { %2771 = vmatpush.bf16.msra.mxu0 %v3958_v35  ;;  %4014 = vmatpush.bf16.msrb.mxu1 %v3958_v35 }
 0x2c2   : > { %v1895_v42 = vpop.f32.mrf.mxu2 }
 0x2c3   : > { %v4619_v2 = vadd.f32 %v1895_v42, %v1847_v54  ;;  %v1848_v47 = vpop.f32.mrf.mxu1  ;;  %v1538_v54 = vadd.f32 %v4567_v19, %v4565_v8 }
 0x2c4   : > { %v1849_v48 = vadd.f32 %v1848_v47, %v4522_v22 }
 0x2ca   : > { %v1897_v60 = vpop.f32.mrf.mxu2 }
 0x2cb   : > { %v4625_v62 = vadd.f32 %v1897_v60, %v1849_v48  ;;  %v1851_v1 = vpop.f32.mrf.mxu1  ;;  %v1547_v48 = vpop.f32.mrf.mxu3  ;;  %v3957_v60 = vld [vmem:[%s4772_s5 + $0x50] sm:$0xff] }
 0x2cc   : > { %v1852_v22 = vadd.f32 %v1851_v1, %v4536_v29  ;;  %v3949_v29 = vld [vmem:[%s4772_s5 + $0x10] sm:$0xff]  ;;  %2772 = vmatpush.bf16.msra.mxu0 %v3957_v60  ;;  %4015 = vmatpush.bf16.msrb.mxu1 %v3957_v60  ;;  %v2332_v1 = vpop.f32.mrf.mxu0 }
 0x2cd   : > { %2723 = vmatpush.bf16.msra.mxu3 %v3949_v29  ;;  %v3922_v29 = vld [vmem:[#allocation2 + $0xe8] sm:$0xf0] }
 0x2ce   : > { %2400 = vmatmul.bf16.gmra.mxu1 %v3582_v63  ;;  %2366 = vmatmul.bf16.gmra.mxu0 %v3614_v28 }
 0x2cf   : > { %2449 = vmatmul.bf16.gmra.mxu2 %v3586_v16 }
 0x2d2   : > { %v1900_v4 = vpop.f32.mrf.mxu2 }
 0x2d3   : > { %v4633_v6 = vadd.f32 %v1900_v4, %v1852_v22  ;;  %v1853_v7 = vpop.f32.mrf.mxu1  ;;  %v1929_v63 = vpop.f32.mrf.mxu3  ;;  %v1543_v22 = vadd.f32 %v4573_v46, %v4571_v45  ;;  %v3947_v45 = vld [vmem:[%s4772_s5] sm:$0xff] }
 0x2d4   : > { %v1854_v21 = vadd.f32 %v1853_v7, %v1533_v30  ;;  %v3920_v7 = vld [vmem:[#allocation2 + $0xdc] sm:$0xf]  ;;  %v2334_v28 = vpop.f32.mrf.mxu0  ;;  %v1930_v61 = vadd.f32 %v1929_v63, %v4583_v39 }
 0x2da   : > { %v1902_v31 = vpop.f32.mrf.mxu2 }
 0x2db   : > { %v4638_v32 = vadd.f32 %v1902_v31, %v1854_v21  ;;  %v1856_v33 = vpop.f32.mrf.mxu1  ;;  %v3621_v21 = vld [vmem:[#allocation2 + $0xe0] sm:$0xf]  ;;  %v1931_v23 = vpop.f32.mrf.mxu3 }
 0x2dc   : > { %v1857_v53 = vadd.f32 %v1856_v33, %v4560_v59  ;;  %v3948_v59 = vld [vmem:[%s4772_s5 + $0x8] sm:$0xff]  ;;  %v3622_v25 = vor.u32 %v3922_v29, %v3621_v21 }
 0x2dd   : > { %2724 = vmatpush.bf16.msra.mxu3 %v3948_v59 }
 0x2de   : > { %2405 = vmatmul.bf16.gmra.mxu1 %v3594_v43  ;;  %v1548_v43 = vadd.f32 %v1547_v48, %v4580_v5  ;;  %v3955_v5 = vld [vmem:[%s4772_s5 + $0x40] sm:$0xff] }
 0x2df   : > { %2454 = vmatmul.bf16.gmra.mxu2 %v3598_v44 }
 0x2e1   : > { %2725 = vmatpush.bf16.msra.mxu3 %v3947_v45 }
 0x2e2   : > { %v1905_v40 = vpop.f32.mrf.mxu2 }
 0x2e3   : > { %v4646_v41 = vadd.f32 %v1905_v40, %v1857_v53  ;;  %v1858_v42 = vpop.f32.mrf.mxu1  ;;  %v1934_v53 = vpop.f32.mrf.mxu3 }
 0x2e4   : > { %v1859_v47 = vadd.f32 %v1858_v42, %v1538_v54  ;;  %v2337_v40 = vpop.f32.mrf.mxu0  ;;  %v1935_v29 = vadd.f32 %v1934_v53, %v4595_v49 }
 0x2ea   : > { %v1907_v55 = vpop.f32.mrf.mxu2 }
 0x2eb   : > { %v4651_v18 = vadd.f32 %v1907_v55, %v1859_v47  ;;  %v1861_v8 = vpop.f32.mrf.mxu1  ;;  %v1936_v59 = vpop.f32.mrf.mxu3 }
 0x2ec   : > { %v1862_v19 = vadd.f32 %v1861_v8, %v4569_v27  ;;  %v3615_v27 = vld [vmem:[#allocation2 + $0xe4] sm:$0xf0]  ;;  %v2339_v50 = vpop.f32.mrf.mxu0 }
 0x2ed   : > { %v3618_v38 = vor.u32 %v3920_v7, %v3615_v27 }
 0x2ee   : > { %2410 = vmatmul.bf16.gmra.mxu1 %v3606_v56 }
 0x2ef   : > { %2459 = vmatmul.bf16.gmra.mxu2 %v3610_v58  ;;  %v4684_v58 = vld [vmem:[%s4771_s4] ss:$0 sm:$0xff] }
 0x2f2   : > { %v1910_v16 = vpop.f32.mrf.mxu2 }
 0x2f3   : > { %v4659_v3 = vadd.f32 %v1910_v16, %v1862_v19  ;;  %v1863_v4 = vpop.f32.mrf.mxu1  ;;  %v1939_v8 = vpop.f32.mrf.mxu3 }
 0x2f4   : > { %v1864_v30 = vadd.f32 %v1863_v4, %v1543_v22 }
 0x2fa   : > { %v1912_v36 = vpop.f32.mrf.mxu2 }
 0x2fb   : > { %v4661_v24 = vadd.f32 %v1912_v36, %v1864_v30  ;;  %v1866_v26 = vpop.f32.mrf.mxu1  ;;  %v1941_v36 = vpop.f32.mrf.mxu3 }
 0x2fc   : > { %v1867_v31 = vadd.f32 %v1866_v26, %v4575_v57  ;;  %v3956_v57 = vld [vmem:[%s4772_s5 + $0x48] sm:$0xff] }
 0x2fd   : > { %2773 = vmatpush.bf16.msra.mxu0 %v3956_v57  ;;  %4016 = vmatpush.bf16.msrb.mxu1 %v3956_v57 }
 0x2fe   : > { %2415 = vmatmul.bf16.gmra.mxu1 %v3618_v38 }
 0x2ff   : > { %2464 = vmatmul.bf16.gmra.mxu2 %v3622_v25 }
 0x301   : > { %2774 = vmatpush.bf16.msra.mxu0 %v3955_v5  ;;  %4017 = vmatpush.bf16.msrb.mxu1 %v3955_v5 }
 0x302   : > { %v1915_v46 = vpop.f32.mrf.mxu2 }
 0x303   : > { %v4668_v44 = vadd.f32 %v1915_v46, %v1867_v31  ;;  %v1868_v33 = vpop.f32.mrf.mxu1  ;;  %v1944_v57 = vpop.f32.mrf.mxu3 }
 0x304   : > { %v1869_v35 = vadd.f32 %v1868_v33, %v1548_v43  ;;  %2775 = vmatmul.bf16.vlgmr.msra.gmra.mxu0 %v4218_v9  ;;  %v1932_v9 = vadd.f32 %v1931_v23, %v4589_v37 }
 0x30a   : > { %v1917_v54 = vpop.f32.mrf.mxu2 }
 0x30b   : > { %v4673_v42 = vadd.f32 %v1917_v54, %v1869_v35  ;;  %v2381_v47 = vpop.f32.mrf.mxu1  ;;  %v1937_v35 = vadd.f32 %v1936_v59, %v4601_v0 }
 0x30c   : > { %v2382_v48 = vadd.f32 %v2381_v47, %v2332_v1  ;;  %v2342_v1 = vpop.f32.mrf.mxu0 }
 0x30e   : > { %2810 = vmatmul.bf16.vlgmr.msrb.gmra.mxu1 %v4251_v17 }
 0x312   : > { %v2430_v51 = vpop.f32.mrf.mxu2 }
 0x313   : > { %v2431_v52 = vadd.f32 %v2430_v51, %v2382_v48  ;;  %v2383_v55 = vpop.f32.mrf.mxu1 }
 0x314   : > { %v2384_v60 = vadd.f32 %v2383_v55, %v2334_v28  ;;  %2780 = vmatmul.bf16.gmra.mxu0 %v4222_v10  ;;  %v2344_v28 = vpop.f32.mrf.mxu0 }
 0x315   : > { %v2470_v56 = vadd.f32 %v2431_v52, %v1930_v61 }
 0x317   : > { %v2490_v19 = vadd.f32 %v4684_v58, %v2470_v56 }
 0x319   : > { %v2506_v4 = vmax.f32 %v2490_v19, 0.0 }
 0x31a   : > { %v2432_v16 = vpop.f32.mrf.mxu2 }
 0x31b   : > { %v2433_v17 = vadd.f32 %v2432_v16, %v2384_v60  ;;  %v2386_v22 = vpop.f32.mrf.mxu1  ;;  %v2522_v7 = vpack.c.bf16 %v2506_v4, %v2506_v4  ;;  %v1946_v60 = vpop.f32.mrf.mxu3  ;;  %v1942_v4 = vadd.f32 %v1941_v36, %v4613_v34 }
 0x31c   : > { %v2387_v30 = vadd.f32 %v2386_v22, %v2337_v40  ;;  %v2347_v54 = vpop.f32.mrf.mxu0 }
 0x31d   : > { %v2471_v39 = vadd.f32 %v2433_v17, %v1932_v9  ;;  %v2554_v37 = vunpack.c.l.b16 %v2522_v7 }
 0x31f   : > { %v2491_v63 = vadd.f32 %v4684_v58, %v2471_v39 }
 0x321   : > { %v2507_v27 = vmax.f32 %v2491_v63, 0.0 }
 0x322   : > { %v2435_v21 = vpop.f32.mrf.mxu2 }
 0x323   : > { %v2523_v38 = vpack.c.bf16 %v2507_v27, %v2507_v27  ;;  %v2436_v25 = vadd.f32 %v2435_v21, %v2387_v30  ;;  %v2388_v26 = vpop.f32.mrf.mxu1  ;;  %v1949_v7 = vpop.f32.mrf.mxu3 }
 0x324   : > { %v2389_v43 = vadd.f32 %v2388_v26, %v2339_v50  ;;  %2785 = vmatmul.bf16.gmra.mxu0 %v4226_v11  ;;  %v1940_v50 = vadd.f32 %v1939_v8, %v4607_v20  ;;  %v2349_v9 = vpop.f32.mrf.mxu0 }
 0x325   : > { %v2555_v23 = vunpack.c.l.b16 %v2523_v38  ;;  %v2472_v31 = vadd.f32 %v2436_v25, %v1935_v29  ;;  %v1945_v25 = vadd.f32 %v1944_v57, %v4619_v2 }
 0x327   : > { %v2570_v45 = vpack.c.b16 %v2555_v23, %v2554_v37  ;;  %v2492_v46 = vadd.f32 %v4684_v58, %v2472_v31 }
 0x329   : > { %2726 = vmatmul.bf16.vlgmr.msra.gmra.mxu3 %v2570_v45  ;;  %v2508_v49 = vmax.f32 %v2492_v46, 0.0 }
 0x32a   : > { %v2437_v33 = vpop.f32.mrf.mxu2 }
 0x32b   : > { %v2438_v10 = vadd.f32 %v2437_v33, %v2389_v43  ;;  %v2391_v40 = vpop.f32.mrf.mxu1  ;;  %v2524_v48 = vpack.c.bf16 %v2508_v49, %v2508_v49  ;;  %v1947_v33 = vadd.f32 %v1946_v60, %v4625_v62 }
 0x32c   : > { %v2392_v5 = vadd.f32 %v2391_v40, %v2342_v1  ;;  %v2352_v38 = vpop.f32.mrf.mxu0 }
 0x32d   : > { %v2473_v53 = vadd.f32 %v2438_v10, %v1937_v35  ;;  %v2556_v59 = vunpack.c.l.b16 %v2524_v48  ;;  %v1951_v35 = vpop.f32.mrf.mxu3  ;;  %v1950_v48 = vadd.f32 %v1949_v7, %v4633_v6 }
 0x32f   : > { %v2493_v47 = vadd.f32 %v4684_v58, %v2473_v53 }
 0x331   : > { %v2509_v51 = vmax.f32 %v2493_v47, 0.0 }
 0x332   : > { %v2440_v61 = vpop.f32.mrf.mxu2 }
 0x333   : > { %v2525_v52 = vpack.c.bf16 %v2509_v51, %v2509_v51  ;;  %v2441_v55 = vadd.f32 %v2440_v61, %v2392_v5  ;;  %v2393_v56 = vpop.f32.mrf.mxu1 }
 0x334   : > { %v2394_v22 = vadd.f32 %v2393_v56, %v2344_v28  ;;  %2790 = vmatmul.bf16.gmra.mxu0 %v4230_v12  ;;  %v2354_v40 = vpop.f32.mrf.mxu0 }
 0x335   : > { %v2474_v0 = vadd.f32 %v2441_v55, %v1940_v50  ;;  %v2557_v19 = vunpack.c.l.b16 %v2525_v52  ;;  %v1954_v62 = vpop.f32.mrf.mxu3 }
 0x337   : > { %v2571_v16 = vpack.c.b16 %v2557_v19, %v2556_v59  ;;  %v2494_v17 = vadd.f32 %v4684_v58, %v2474_v0 }
 0x339   : > { %2731 = vmatmul.bf16.gmra.mxu3 %v2571_v16  ;;  %v2510_v63 = vmax.f32 %v2494_v17, 0.0 }
 0x33a   : > { %v2442_v1 = vpop.f32.mrf.mxu2 }
 0x33b   : > { %v2443_v11 = vadd.f32 %v2442_v1, %v2394_v22  ;;  %v2396_v39 = vpop.f32.mrf.mxu1  ;;  %v2526_v27 = vpack.c.bf16 %v2510_v63, %v2510_v63 }
 0x33c   : > { %v2397_v30 = vadd.f32 %v2396_v39, %v2347_v54  ;;  %v2357_v0 = vpop.f32.mrf.mxu0 }
 0x33d   : > { %v2475_v20 = vadd.f32 %v2443_v11, %v1942_v4  ;;  %v2558_v36 = vunpack.c.l.b16 %v2526_v27  ;;  %v1956_v1 = vpop.f32.mrf.mxu3 }
 0x33f   : > { %v2495_v8 = vadd.f32 %v4684_v58, %v2475_v20 }
 0x341   : > { %v2511_v21 = vmax.f32 %v2495_v8, 0.0 }
 0x342   : > { %v2445_v29 = vpop.f32.mrf.mxu2 }
 0x343   : > { %v2527_v26 = vpack.c.bf16 %v2511_v21, %v2511_v21  ;;  %v2446_v28 = vadd.f32 %v2445_v29, %v2397_v30  ;;  %v2398_v37 = vpop.f32.mrf.mxu1  ;;  %v1955_v30 = vadd.f32 %v1954_v62, %v4646_v41 }
 0x344   : > { %v2399_v46 = vadd.f32 %v2398_v37, %v2349_v9  ;;  %2795 = vmatmul.bf16.gmra.mxu0 %v4234_v13  ;;  %v1952_v9 = vadd.f32 %v1951_v35, %v4638_v32  ;;  %v2359_v39 = vpop.f32.mrf.mxu0 }
 0x345   : > { %v2476_v34 = vadd.f32 %v2446_v28, %v1945_v25  ;;  %v2559_v23 = vunpack.c.l.b16 %v2527_v26  ;;  %v1959_v26 = vpop.f32.mrf.mxu3 }
 0x347   : > { %v2572_v31 = vpack.c.b16 %v2559_v23, %v2558_v36  ;;  %v2496_v45 = vadd.f32 %v4684_v58, %v2476_v34  ;;  %v1957_v23 = vadd.f32 %v1956_v1, %v4651_v18 }
 0x349   : > { %2736 = vmatmul.bf16.gmra.mxu3 %v2572_v31  ;;  %v2512_v49 = vmax.f32 %v2496_v45, 0.0 }
 0x34a   : > { %v2447_v43 = vpop.f32.mrf.mxu2 }
 0x34b   : > { %v2448_v12 = vadd.f32 %v2447_v43, %v2399_v46  ;;  %v2401_v10 = vpop.f32.mrf.mxu1  ;;  %v2528_v54 = vpack.c.bf16 %v2512_v49, %v2512_v49 }
 0x34c   : > { %v2402_v53 = vadd.f32 %v2401_v10, %v2352_v38  ;;  %v2362_v34 = vpop.f32.mrf.mxu0  ;;  %v1960_v10 = vadd.f32 %v1959_v26, %v4659_v3 }
 0x34d   : > { %v2477_v2 = vadd.f32 %v2448_v12, %v1947_v33  ;;  %v2560_v55 = vunpack.c.l.b16 %v2528_v54 }
 0x34f   : > { %v2497_v57 = vadd.f32 %v4684_v58, %v2477_v2 }
 0x351   : > { %v2513_v47 = vmax.f32 %v2497_v57, 0.0 }
 0x352   : > { %v2450_v5 = vpop.f32.mrf.mxu2 }
 0x353   : > { %v2529_v51 = vpack.c.bf16 %v2513_v47, %v2513_v47  ;;  %v2451_v61 = vadd.f32 %v2450_v5, %v2402_v53  ;;  %v2403_v50 = vpop.f32.mrf.mxu1 }
 0x354   : > { %v2404_v60 = vadd.f32 %v2403_v50, %v2354_v40  ;;  %2800 = vmatmul.bf16.gmra.mxu0 %v4238_v14  ;;  %v1961_v40 = vpop.f32.mrf.mxu3  ;;  %v2364_v57 = vpop.f32.mrf.mxu0 }
 0x355   : > { %v2478_v52 = vadd.f32 %v2451_v61, %v1950_v48  ;;  %v2561_v56 = vunpack.c.l.b16 %v2529_v51  ;;  %v1962_v50 = vadd.f32 %v1961_v40, %v4661_v24 }
 0x357   : > { %v2573_v59 = vpack.c.b16 %v2561_v56, %v2560_v55  ;;  %v2498_v19 = vadd.f32 %v4684_v58, %v2478_v52 }
 0x359   : > { %2741 = vmatmul.bf16.gmra.mxu3 %v2573_v59  ;;  %v2514_v22 = vmax.f32 %v2498_v19, 0.0 }
 0x35a   : > { %v2452_v16 = vpop.f32.mrf.mxu2 }
 0x35b   : > { %v2453_v13 = vadd.f32 %v2452_v16, %v2404_v60  ;;  %v2406_v17 = vpop.f32.mrf.mxu1  ;;  %v2530_v63 = vpack.c.bf16 %v2514_v22, %v2514_v22 }
 0x35c   : > { %v2407_v11 = vadd.f32 %v2406_v17, %v2357_v0  ;;  %v1964_v55 = vpop.f32.mrf.mxu3  ;;  %v2367_v56 = vpop.f32.mrf.mxu0 }
 0x35d   : > { %v2479_v6 = vadd.f32 %v2453_v13, %v1952_v9  ;;  %v2562_v29 = vunpack.c.l.b16 %v2530_v63  ;;  %v1965_v9 = vadd.f32 %v1964_v55, %v4668_v44 }
 0x35f   : > { %v2499_v4 = vadd.f32 %v4684_v58, %v2479_v6 }
 0x361   : > { %v2515_v20 = vmax.f32 %v2499_v4, 0.0 }
 0x362   : > { %v2455_v8 = vpop.f32.mrf.mxu2 }
 0x363   : > { %v2531_v7 = vpack.c.bf16 %v2515_v20, %v2515_v20  ;;  %v2456_v27 = vadd.f32 %v2455_v8, %v2407_v11  ;;  %v2408_v21 = vpop.f32.mrf.mxu1 }
 0x364   : > { %v2409_v37 = vadd.f32 %v2408_v21, %v2359_v39  ;;  %2805 = vmatmul.bf16.gmra.mxu0 %v4242_v15  ;;  %v1966_v11 = vpop.f32.mrf.mxu3  ;;  %v2369_v39 = vpop.f32.mrf.mxu0 }
 0x365   : > { %v2480_v32 = vadd.f32 %v2456_v27, %v1955_v30  ;;  %v2563_v38 = vunpack.c.l.b16 %v2531_v7  ;;  %v1967_v30 = vadd.f32 %v1966_v11, %v4673_v42  ;;  %v4726_v42 = vld [vmem:[%s4773_s6] ss:$0 sm:$0xff] }
 0x367   : > { %v2574_v25 = vpack.c.b16 %v2563_v38, %v2562_v29  ;;  %v2500_v28 = vadd.f32 %v4684_v58, %v2480_v32 }
 0x369   : > { %2746 = vmatmul.bf16.gmra.mxu3 %v2574_v25  ;;  %v2516_v45 = vmax.f32 %v2500_v28, 0.0 }
 0x36a   : > { %v2457_v36 = vpop.f32.mrf.mxu2 }
 0x36b   : > { %v2458_v14 = vadd.f32 %v2457_v36, %v2409_v37  ;;  %v2411_v31 = vpop.f32.mrf.mxu1  ;;  %v2532_v33 = vpack.c.bf16 %v2516_v45, %v2516_v45 }
 0x36c   : > { %v2412_v43 = vadd.f32 %v2411_v31, %v2362_v34 }
 0x36d   : > { %v2481_v41 = vadd.f32 %v2458_v14, %v1957_v23  ;;  %v2564_v54 = vunpack.c.l.b16 %v2532_v33 }
 0x36f   : > { %v2501_v46 = vadd.f32 %v4684_v58, %v2481_v41 }
 0x371   : > { %v2517_v35 = vmax.f32 %v2501_v46, 0.0 }
 0x372   : > { %v2460_v12 = vpop.f32.mrf.mxu2 }
 0x373   : > { %v2533_v49 = vpack.c.bf16 %v2517_v35, %v2517_v35  ;;  %v2461_v2 = vadd.f32 %v2460_v12, %v2412_v43  ;;  %v2413_v53 = vpop.f32.mrf.mxu1 }
 0x374   : > { %v2414_v51 = vadd.f32 %v2413_v53, %v2364_v57 }
 0x375   : > { %v2482_v18 = vadd.f32 %v2461_v2, %v1960_v10  ;;  %v2565_v47 = vunpack.c.l.b16 %v2533_v49 }
 0x377   : > { %v2575_v5 = vpack.c.b16 %v2565_v47, %v2564_v54  ;;  %v2502_v48 = vadd.f32 %v4684_v58, %v2482_v18 }
 0x379   : > { %2751 = vmatmul.bf16.gmra.mxu3 %v2575_v5  ;;  %v2518_v52 = vmax.f32 %v2502_v48, 0.0 }
 0x37a   : > { %v2462_v61 = vpop.f32.mrf.mxu2 }
 0x37b   : > { %v2463_v15 = vadd.f32 %v2462_v61, %v2414_v51  ;;  %v2416_v62 = vpop.f32.mrf.mxu1  ;;  %v2534_v19 = vpack.c.bf16 %v2518_v52, %v2518_v52 }
 0x37c   : > { %v2417_v59 = vadd.f32 %v2416_v62, %v2367_v56 }
 0x37d   : > { %v2483_v3 = vadd.f32 %v2463_v15, %v1962_v50  ;;  %v2566_v6 = vunpack.c.l.b16 %v2534_v19 }
 0x37f   : > { %v2503_v0 = vadd.f32 %v4684_v58, %v2483_v3 }
 0x381   : > { %v2519_v60 = vmax.f32 %v2503_v0, 0.0  ;;  %v2776_v38 = vpop.f32.mrf.mxu0 }
 0x382   : > { %v2465_v16 = vpop.f32.mrf.mxu2 }
 0x383   : > { %v2535_v13 = vpack.c.bf16 %v2519_v60, %v2519_v60  ;;  %v2466_v17 = vadd.f32 %v2465_v16, %v2417_v59  ;;  %v2418_v24 = vpop.f32.mrf.mxu1 }
 0x384   : > { %v2419_v20 = vadd.f32 %v2418_v24, %v2369_v39 }
 0x385   : > { %v2484_v22 = vadd.f32 %v2466_v17, %v1965_v9  ;;  %v2567_v1 = vunpack.c.l.b16 %v2535_v13 }
 0x387   : > { %v2576_v4 = vpack.c.b16 %v2567_v1, %v2566_v6  ;;  %v2504_v63 = vadd.f32 %v4684_v58, %v2484_v22 }
 0x389   : > { %2756 = vmatmul.bf16.gmra.mxu3 %v2576_v4  ;;  %v2520_v27 = vmax.f32 %v2504_v63, 0.0  ;;  %v2778_v34 = vpop.f32.mrf.mxu0 }
 0x38a   : > { %v2467_v8 = vpop.f32.mrf.mxu2 }
 0x38b   : > { %v2468_v7 = vadd.f32 %v2467_v8, %v2419_v20  ;;  %v2536_v32 = vpack.c.bf16 %v2520_v27, %v2520_v27 }
 0x38d   : > { %v2485_v21 = vadd.f32 %v2468_v7, %v1967_v30  ;;  %v2568_v26 = vunpack.c.l.b16 %v2536_v32 }
 0x38f   : > { %v2505_v44 = vadd.f32 %v4684_v58, %v2485_v21 }
 0x391   : > { %v2521_v29 = vmax.f32 %v2505_v44, 0.0  ;;  %v2781_v36 = vpop.f32.mrf.mxu0 }
 0x393   : > { %v2537_v25 = vpack.c.bf16 %v2521_v29, %v2521_v29 }
 0x395   : > { %v2569_v28 = vunpack.c.l.b16 %v2537_v25 }
 0x397   : > { %v2577_v37 = vpack.c.b16 %v2569_v28, %v2568_v26 }
 0x399   : > { %2761 = vmatmul.bf16.gmra.mxu3 %v2577_v37  ;;  %v2783_v14 = vpop.f32.mrf.mxu0 }
 0x3a1   : > { %v2786_v35 = vpop.f32.mrf.mxu0 }
 0x3a9   : > { %v2788_v2 = vpop.f32.mrf.mxu0 }
 0x3ac   : > { %v2727_v23 = vpop.f32.mrf.mxu3 }
 0x3ad   : > { %v2728_v58 = vadd.f32 %v4726_v42, %v2727_v23 }
 0x3af   : > { %v2777_v45 = vadd.f32 %v2776_v38, %v2728_v58 }
 0x3b1   : > { %v2816_v43 = vmax.f32 %v2777_v45, 0.0  ;;  %v2791_v51 = vpop.f32.mrf.mxu0 }
 0x3b4   : > { %v2729_v31 = vpop.f32.mrf.mxu3 }
 0x3b5   : > { %v2730_v41 = vadd.f32 %v4726_v42, %v2729_v31 }
 0x3b7   : > { %v2779_v46 = vadd.f32 %v2778_v34, %v2730_v41 }
 0x3b9   : > { %v2817_v33 = vmax.f32 %v2779_v46, 0.0  ;;  %v2793_v3 = vpop.f32.mrf.mxu0 }
 0x3bb   : > { %v3966_v12 = vpack.c.bf16 %v2817_v33, %v2816_v43 }
 0x3bc   : > { %v2732_v10 = vpop.f32.mrf.mxu3 }
 0x3bd   : > { %3967 = vst [vmem:[%s4196_s23] sm:$0xff] %v3966_v12   ;;  %v2733_v40 = vadd.f32 %v4726_v42, %v2732_v10  ;;  %v2811_v10 = vpop.f32.mrf.mxu1 }
 0x3bf   : > { %v2782_v57 = vadd.f32 %v2781_v36, %v2733_v40 }
 0x3c1   : > { %v2818_v54 = vmax.f32 %v2782_v57, 0.0  ;;  %v2796_v60 = vpop.f32.mrf.mxu0 }
 0x3c4   : > { %v2734_v49 = vpop.f32.mrf.mxu3 }
 0x3c5   : > { %v2735_v53 = vadd.f32 %v4726_v42, %v2734_v49 }
 0x3c7   : > { %v2784_v18 = vadd.f32 %v2783_v14, %v2735_v53 }
 0x3c9   : > { %v2819_v47 = vmax.f32 %v2784_v18, 0.0  ;;  %v2798_v4 = vpop.f32.mrf.mxu0  ;;  %v2813_v18 = vpop.f32.mrf.mxu1 }
 0x3cb   : > { %v3971_v5 = vpack.c.bf16 %v2819_v47, %v2818_v54 }
 0x3cc   : > { %v2737_v48 = vpop.f32.mrf.mxu3 }
 0x3cd   : > { %4003 = vst [vmem:[%s4196_s23 + $0x8] sm:$0xff] %v3971_v5   ;;  %v2738_v61 = vadd.f32 %v4726_v42, %v2737_v48 }
 0x3cf   : > { %v2787_v15 = vadd.f32 %v2786_v35, %v2738_v61 }
 0x3d1   : > { %v2820_v55 = vmax.f32 %v2787_v15, 0.0  ;;  %v2801_v8 = vpop.f32.mrf.mxu0 }
 0x3d4   : > { %v2739_v50 = vpop.f32.mrf.mxu3 }
 0x3d5   : > { %v2740_v62 = vadd.f32 %v4726_v42, %v2739_v50 }
 0x3d7   : > { %v2789_v52 = vadd.f32 %v2788_v2, %v2740_v62 }
 0x3d9   : > { %v2821_v56 = vmax.f32 %v2789_v52, 0.0  ;;  %v2803_v32 = vpop.f32.mrf.mxu0 }
 0x3db   : > { %v3976_v0 = vpack.c.bf16 %v2821_v56, %v2820_v55 }
 0x3dc   : > { %v2742_v59 = vpop.f32.mrf.mxu3 }
 0x3dd   : > { %4004 = vst [vmem:[%s4196_s23 + $0x10] sm:$0xff] %v3976_v0   ;;  %v2743_v19 = vadd.f32 %v4726_v42, %v2742_v59 }
 0x3df   : > { %v2792_v9 = vadd.f32 %v2791_v51, %v2743_v19 }
 0x3e1   : > { %v2822_v22 = vmax.f32 %v2792_v9, 0.0  ;;  %v2806_v36 = vpop.f32.mrf.mxu0 }
 0x3e4   : > { %v2744_v16 = vpop.f32.mrf.mxu3 }
 0x3e5   : > { %v2745_v13 = vadd.f32 %v4726_v42, %v2744_v16 }
 0x3e7   : > { %v2794_v17 = vadd.f32 %v2793_v3, %v2745_v13 }
 0x3e9   : > { %v2823_v6 = vmax.f32 %v2794_v17, 0.0  ;;  %v2808_v45 = vpop.f32.mrf.mxu0 }
 0x3eb   : > { %v3981_v1 = vpack.c.bf16 %v2823_v6, %v2822_v22 }
 0x3ec   : > { %v2747_v24 = vpop.f32.mrf.mxu3 }
 0x3ed   : > { %4005 = vst [vmem:[%s4196_s23 + $0x18] sm:$0xff] %v3981_v1   ;;  %v2748_v11 = vadd.f32 %v4726_v42, %v2747_v24 }
 0x3ef   : > { %v2797_v63 = vadd.f32 %v2796_v60, %v2748_v11 }
 0x3f1   : > { %v2824_v7 = vmax.f32 %v2797_v63, 0.0 }
 0x3f4   : > { %v2749_v39 = vpop.f32.mrf.mxu3 }
 0x3f5   : > { %v2750_v20 = vadd.f32 %v4726_v42, %v2749_v39 }
 0x3f7   : > { %v2799_v30 = vadd.f32 %v2798_v4, %v2750_v20 }
 0x3f9   : > { %v2825_v27 = vmax.f32 %v2799_v30, 0.0 }
 0x3fb   : > { %v3986_v21 = vpack.c.bf16 %v2825_v27, %v2824_v7 }
 0x3fc   : > { %v2752_v44 = vpop.f32.mrf.mxu3 }
 0x3fd   : > { %4006 = vst [vmem:[%s4196_s23 + $0x20] sm:$0xff] %v3986_v21   ;;  %v2753_v29 = vadd.f32 %v4726_v42, %v2752_v44 }
 0x3ff   : > { %v2802_v25 = vadd.f32 %v2801_v8, %v2753_v29 }
 0x401   : > { %v2826_v37 = vmax.f32 %v2802_v25, 0.0 }
 0x404   : > { %v2754_v38 = vpop.f32.mrf.mxu3 }
 0x405   : > { %v2755_v26 = vadd.f32 %v4726_v42, %v2754_v38 }
 0x407   : > { %v2804_v28 = vadd.f32 %v2803_v32, %v2755_v26 }
 0x409   : > { %v2827_v34 = vmax.f32 %v2804_v28, 0.0 }
 0x40b   : > { %v3991_v23 = vpack.c.bf16 %v2827_v34, %v2826_v37 }
 0x40c   : > { %v2757_v14 = vpop.f32.mrf.mxu3 }
 0x40d   : > { %4007 = vst [vmem:[%s4196_s23 + $0x28] sm:$0xff] %v3991_v23   ;;  %v2758_v58 = vadd.f32 %v4726_v42, %v2757_v14 }
 0x40f   : > { %v2807_v41 = vadd.f32 %v2806_v36, %v2758_v58 }
 0x411   : > { %v2828_v33 = vmax.f32 %v2807_v41, 0.0 }
 0x414   : > { %v2759_v31 = vpop.f32.mrf.mxu3 }
 0x415   : > { %v2760_v46 = vadd.f32 %v4726_v42, %v2759_v31 }
 0x417   : > { %v2809_v43 = vadd.f32 %v2808_v45, %v2760_v46 }
 0x419   : > { %v2829_v35 = vmax.f32 %v2809_v43, 0.0 }
 0x41b   : > { %v3996_v12 = vpack.c.bf16 %v2829_v35, %v2828_v33 }
 0x41c   : > { %v2762_v40 = vpop.f32.mrf.mxu3 }
 0x41d   : > { %4008 = vst [vmem:[%s4196_s23 + $0x30] sm:$0xff] %v3996_v12   ;;  %v2763_v49 = vadd.f32 %v4726_v42, %v2762_v40 }
 0x41f   : > { %v2812_v57 = vadd.f32 %v2811_v10, %v2763_v49 }
 0x421   : > { %v2830_v47 = vmax.f32 %v2812_v57, 0.0 }
 0x424   : > { %v2764_v2 = vpop.f32.mrf.mxu3 }
 0x425   : > { %v2765_v53 = vadd.f32 %v4726_v42, %v2764_v2 }
 0x427   : > { %v2814_v54 = vadd.f32 %v2813_v18, %v2765_v53 }
 0x429   : > { %v2831_v5 = vmax.f32 %v2814_v54, 0.0 }
 0x42b   : > { %v4001_v48 = vpack.c.bf16 %v2831_v5, %v2830_v47 }
 0x42d   : > { %4009 = vst [vmem:[%s4196_s23 + $0x38] sm:$0xff] %v4001_v48  }
 0x42e PF: > { %s17_s28 = sadd.s32 1, %s4103_s28   ;;  %s4779_s24 = smov %s4095_s26 }
 0x42f   : > { %p14_p10 = scmp.ge.s32.totalorder %s17_s28, 6   ;;  %s4780_s25 = smov %s4099_s27 }
 0x430   : > { %s4781_s26 = smov %s4784_s29  ;;  %s4782_s27 = smov %s4788_s30 }
 0x431   :  { %16 = sbr.rel (!%p14_p10) target bundleno = 3 (0x3), region = 91 }

</bundles_post_ra>
